<compile_context>
chip_gen: v7x
topology: tpu7x:2x2x1
jax: 0.10.0
libtpu: 0.0.40
codegen_flags: <defaults>
</compile_context>

<pallas_src>
import jax
import jax.numpy as jnp
from jax.experimental import pallas as pl
from jax.experimental.pallas import tpu as pltpu

IN_FEATURES = 768 * 2   # 1536
HIDDEN = 768
OUT_FEATURES = 17
OUT_PAD = 128           # lane-dense padded output width (sliced back to 17)


def _round_up(n, m):
    return ((n + m - 1) // m) * m


def _cdiv(a, b):
    return -(-a // b)


def _choose_tb(B, block_b):
    """Batch tile: minimize padding waste, keep a multiple of 8 sublanes, and
    give v7x's two TensorCores >= 2 grid steps when the batch allows it."""
    n_steps = max(1, _cdiv(B, block_b))
    if n_steps == 1 and B >= 16:
        n_steps = 2  # v7x: 2 TCs per chip; "parallel" axis splits across them
    return _round_up(_cdiv(B, n_steps), 8)


def mlp_kernel(x_ref, w1_ref, b1_ref, w2_ref, b2_ref, o_ref):
    # In-kernel cast to bf16 (no-op if caller already passed bf16 x).
    x_bf = x_ref[...].astype(jnp.bfloat16)
    # fc1: (TB, 1536) bf16 @ (1536, 768) bf16 on MXU, f32 accumulate, + f32 bias
    h = jnp.dot(x_bf, w1_ref[...],
                preferred_element_type=jnp.float32) + b1_ref[...]
    # fc2: (TB, 768) @ (768, 128) (cols 17..127 are zero), + padded f32 bias
    y = jnp.dot(h.astype(jnp.bfloat16), w2_ref[...],
                preferred_element_type=jnp.float32) + b2_ref[...]
    o_ref[...] = y.astype(o_ref.dtype)


def net_forward(x, w1, b1, w2, b2, *, block_b=None):
    """x: (B, 1536) f32 or bf16; w1: (1536,768) bf16; b1: (1,768) f32;
    w2: (768,128) bf16 (cols >=17 must be zero); b2: (1,128) f32 (cols >=17 zero).
    Returns (B, 17) f32."""
    B = x.shape[0]
    x_bytes = jnp.dtype(x.dtype).itemsize
    if block_b is None:
        # bf16 x tiles are half the size -> can afford a bigger batch tile.
        block_b = 1024 if x_bytes <= 2 else 512

    TB = _choose_tb(B, block_b)
    grid = (_cdiv(B, TB),)   # ragged last block: padded reads / masked writes

    cost = pl.CostEstimate(
        flops=2 * B * IN_FEATURES * HIDDEN + 2 * B * HIDDEN * OUT_PAD,
        transcendentals=0,
        bytes_accessed=(x.size * x_bytes + w1.size * 2 + w2.size * 2
                        + b1.size * 4 + b2.size * 4 + B * OUT_PAD * 4),
    )

    out = pl.pallas_call(
        mlp_kernel,
        out_shape=jax.ShapeDtypeStruct((B, OUT_PAD), jnp.float32),
        grid=grid,
        in_specs=[
            # x tile marches down the batch; weights/biases stay resident.
            pl.BlockSpec((TB, IN_FEATURES), lambda i: (i, 0)),
            pl.BlockSpec((IN_FEATURES, HIDDEN), lambda i: (0, 0)),
            pl.BlockSpec((1, HIDDEN), lambda i: (0, 0)),
            pl.BlockSpec((HIDDEN, OUT_PAD), lambda i: (0, 0)),
            pl.BlockSpec((1, OUT_PAD), lambda i: (0, 0)),
        ],
        out_specs=pl.BlockSpec((TB, OUT_PAD), lambda i: (i, 0)),
        compiler_params=pltpu.CompilerParams(
            dimension_semantics=("parallel",),   # v7x: split batch over 2 TCs
            vmem_limit_bytes=32 * 1024 * 1024,   # safe on v5e/v6e/v7x
        ),
        cost_estimate=cost,
    )(x, w1, b1, w2, b2)

    # Final 17-column slice (kept so the wrapper matches Net's (B,17) output;
    # consumers that tolerate the padded block can skip it).
    return out[:, :OUT_FEATURES]


def init_params(key):
    """Deterministic init mimicking PyTorch's nn.Linear default
    (uniform in [-1/sqrt(fan_in), 1/sqrt(fan_in)]). Weights stored as
    (in, out) bf16 for the MXU; fc2 weight/bias zero-padded to 128 outputs."""
    k1, k2, k3, k4 = jax.random.split(key, 4)
    bound1 = 1.0 / jnp.sqrt(jnp.float32(IN_FEATURES))
    bound2 = 1.0 / jnp.sqrt(jnp.float32(HIDDEN))

    w1 = jax.random.uniform(k1, (IN_FEATURES, HIDDEN), jnp.float32,
                            minval=-bound1, maxval=bound1)
    b1 = jax.random.uniform(k2, (1, HIDDEN), jnp.float32,
                            minval=-bound1, maxval=bound1)
    w2 = jax.random.uniform(k3, (HIDDEN, OUT_FEATURES), jnp.float32,
                            minval=-bound2, maxval=bound2)
    b2 = jax.random.uniform(k4, (1, OUT_FEATURES), jnp.float32,
                            minval=-bound2, maxval=bound2)

    w1_bf = w1.astype(jnp.bfloat16)
    # Zero-pad fc2 params to 128 output columns (padding MUST be zeros).
    w2_pad = jnp.zeros((HIDDEN, OUT_PAD), jnp.float32)
    w2_pad = w2_pad.at[:, :OUT_FEATURES].set(w2)
    w2_bf = w2_pad.astype(jnp.bfloat16)
    b2_pad = jnp.zeros((1, OUT_PAD), jnp.float32)
    b2_pad = b2_pad.at[:, :OUT_FEATURES].set(b2)
    return w1_bf, b1, w2_bf, b2_pad


if __name__ == "__main__":
    key = jax.random.PRNGKey(0)
    pkey, xkey = jax.random.split(key)
    w1, b1, w2, b2 = init_params(pkey)

    B = 2
    x = jax.random.normal(xkey, (B, IN_FEATURES), jnp.float32)

    out = net_forward(x, w1, b1, w2, b2)
    out = jax.block_until_ready(out)
    assert out.shape == (B, OUT_FEATURES)

    # Pure-JAX reference with the same bf16-rounded inputs (f32 accumulate),
    # matching the kernel's precision path.
    x_r = x.astype(jnp.bfloat16).astype(jnp.float32)
    h_r = x_r @ w1.astype(jnp.float32) + b1
    h_r = h_r.astype(jnp.bfloat16).astype(jnp.float32)
    y_r = h_r @ w2.astype(jnp.float32) + b2
    ref = y_r[:, :OUT_FEATURES]

    assert jnp.allclose(out, ref, atol=1e-2, rtol=1e-2), (
        float(jnp.max(jnp.abs(out - ref))))

    print("KERNEL_OK")
</pallas_src>

<mosaic_0001>
module attributes {stable_mosaic.version = 11 : i64} {
  func.func @mlp_kernel(%arg0: i32, %arg1: memref<8x1536xf32, #tpu.memory_space<vmem>>, %arg2: memref<1536x768xbf16, #tpu.memory_space<vmem>>, %arg3: memref<1x768xf32, #tpu.memory_space<vmem>>, %arg4: memref<768x128xbf16, #tpu.memory_space<vmem>>, %arg5: memref<1x128xf32, #tpu.memory_space<vmem>>, %arg6: memref<8x128xf32, #tpu.memory_space<vmem>>) attributes {dimension_semantics = [#tpu.dimension_semantics<parallel>], iteration_bounds = array<i64: 1>, scalar_prefetch = 0 : i64, scratch_operands = 0 : i64, tpu.core_type = #tpu.core_type<tc>, window_params = [{transform_indices = @transform_0, window_bounds = array<i64: 8, 1536>}, {pipeline_mode = #tpu.pipeline_mode<synchronous>, transform_indices = @transform_1, window_bounds = array<i64: 1536, 768>}, {pipeline_mode = #tpu.pipeline_mode<synchronous>, transform_indices = @transform_2, window_bounds = array<i64: 1, 768>}, {pipeline_mode = #tpu.pipeline_mode<synchronous>, transform_indices = @transform_3, window_bounds = array<i64: 768, 128>}, {pipeline_mode = #tpu.pipeline_mode<synchronous>, transform_indices = @transform_4, window_bounds = array<i64: 1, 128>}, {transform_indices = @transform_5, window_bounds = array<i64: 8, 128>}]} {
    %c0 = arith.constant 0 : index
    %c0_0 = arith.constant 0 : index
    %0 = vector.load %arg1[%c0, %c0_0] : memref<8x1536xf32, #tpu.memory_space<vmem>>, vector<8x1536xf32>
    %1 = arith.truncf %0 : vector<8x1536xf32> to vector<8x1536xbf16>
    %c0_1 = arith.constant 0 : index
    %c0_2 = arith.constant 0 : index
    %2 = vector.load %arg2[%c0_1, %c0_2] : memref<1536x768xbf16, #tpu.memory_space<vmem>>, vector<1536x768xbf16>
    %cst = arith.constant dense<0.000000e+00> : vector<8x768xf32>
    %3 = tpu.matmul %1, %2, %cst {dimension_numbers = #tpu.dot_dimension_numbers<[1], [0], [0], [1], [0, 0, 1, 1], [], []>} : vector<8x1536xbf16>, vector<1536x768xbf16>, vector<8x768xf32> -> vector<8x768xf32>
    %c0_3 = arith.constant 0 : index
    %c0_4 = arith.constant 0 : index
    %4 = vector.load %arg3[%c0_3, %c0_4] : memref<1x768xf32, #tpu.memory_space<vmem>>, vector<1x768xf32>
    %5 = vector.broadcast %4 : vector<1x768xf32> to vector<8x768xf32>
    %6 = arith.addf %3, %5 : vector<8x768xf32>
    %7 = arith.truncf %6 : vector<8x768xf32> to vector<8x768xbf16>
    %c0_5 = arith.constant 0 : index
    %c0_6 = arith.constant 0 : index
    %8 = vector.load %arg4[%c0_5, %c0_6] : memref<768x128xbf16, #tpu.memory_space<vmem>>, vector<768x128xbf16>
    %cst_7 = arith.constant dense<0.000000e+00> : vector<8x128xf32>
    %9 = tpu.matmul %7, %8, %cst_7 {dimension_numbers = #tpu.dot_dimension_numbers<[1], [0], [0], [1], [0, 0, 1, 1], [], []>} : vector<8x768xbf16>, vector<768x128xbf16>, vector<8x128xf32> -> vector<8x128xf32>
    %c0_8 = arith.constant 0 : index
    %c0_9 = arith.constant 0 : index
    %10 = vector.load %arg5[%c0_8, %c0_9] : memref<1x128xf32, #tpu.memory_space<vmem>>, vector<1x128xf32>
    %11 = vector.broadcast %10 : vector<1x128xf32> to vector<8x128xf32>
    %12 = arith.addf %9, %11 : vector<8x128xf32>
    %c0_10 = arith.constant 0 : index
    %c0_11 = arith.constant 0 : index
    %13 = vector.load %arg6[%c0_10, %c0_11] : memref<8x128xf32, #tpu.memory_space<vmem>>, vector<8x128xf32>
    tpu.vector_store %arg6[%c0_10, %c0_11], %12 {strides = array<i32>} : memref<8x128xf32, #tpu.memory_space<vmem>>, vector<8x128xf32>,
    return
  }
  func.func @transform_0(%arg0: i32) -> (i32, i32) {
    %c0_i32 = arith.constant 0 : i32
    %c0_i32_0 = arith.constant 0 : i32
    return %arg0, %c0_i32 : i32, i32
  }
  func.func @transform_1(%arg0: i32) -> (i32, i32) {
    %c0_i32 = arith.constant 0 : i32
    %c0_i32_0 = arith.constant 0 : i32
    %c0_i32_1 = arith.constant 0 : i32
    return %c0_i32, %c0_i32_0 : i32, i32
  }
  func.func @transform_2(%arg0: i32) -> (i32, i32) {
    %c0_i32 = arith.constant 0 : i32
    %c0_i32_0 = arith.constant 0 : i32
    %c0_i32_1 = arith.constant 0 : i32
    return %c0_i32, %c0_i32_0 : i32, i32
  }
  func.func @transform_3(%arg0: i32) -> (i32, i32) {
    %c0_i32 = arith.constant 0 : i32
    %c0_i32_0 = arith.constant 0 : i32
    %c0_i32_1 = arith.constant 0 : i32
    return %c0_i32, %c0_i32_0 : i32, i32
  }
  func.func @transform_4(%arg0: i32) -> (i32, i32) {
    %c0_i32 = arith.constant 0 : i32
    %c0_i32_0 = arith.constant 0 : i32
    %c0_i32_1 = arith.constant 0 : i32
    return %c0_i32, %c0_i32_0 : i32, i32
  }
  func.func @transform_5(%arg0: i32) -> (i32, i32) {
    %c0_i32 = arith.constant 0 : i32
    %c0_i32_0 = arith.constant 0 : i32
    return %arg0, %c0_i32 : i32, i32
  }
}

</mosaic_0001>

<bundles_post_ra>
// kernel: tpu_custom_call.1
= control target key start
LH: loop header
LB: loop body
LE: loop exit
PB: predicated region body
PF: predicated region fallthrough
CT: control target
= control target key end

     0   :  { %10 = vsyncpa [#allocation3], 0  ;;  %s7108_s0 = inlined_call_operand.hbm [shape: f32[2,1536], index: 0, kind: input, shape index: {}]   ;;  %s7109_s1 = inlined_call_operand.hbm [shape: bf16[1536,768], index: 1, kind: input, shape index: {}]   ;;  %s7110_s2 = inlined_call_operand.hbm [shape: f32[1,768], index: 2, kind: input, shape index: {}]   ;;  %s7111_s3 = inlined_call_operand.hbm [shape: bf16[768,128], index: 3, kind: input, shape index: {}]   ;;  %s7112_s4 = inlined_call_operand.hbm [shape: f32[1,128], index: 4, kind: input, shape index: {}]   ;;  %s7113_s5 = inlined_call_operand.hbm [shape: f32[2,128], index: 5, kind: output, shape index: {}]  }
   0x1   :  { %11 = vsyncpa [#allocation6], 0 }
   0x2   :  { %12 = vsyncpa [#allocation9], 0 }
   0x3   :  { %13 = vsyncpa [#allocation4], 0 }
   0x4   :  { %18 = vsyncadd [#allocation3], 1152  ;;  %s6843_s18 = smov [#allocation5]   ;;  %s6844_s20 = smov [#allocation8]  }
   0x5   :  { %s31_s19 = sshll.u32 %s6843_s18, 4  ;;  %s53_s21 = sshll.u32 %s6844_s20, 4  ;;  %s32_s19 = int_to_ptr.vmem [resolvable:$true] %s31_s19  ;;  %s6886_s21 = int_to_ptr.vmem [resolvable:$true] %s53_s21 }
   0x6   :  { %s6703_s24 = scalar_lea.hbm %s7109_s1, 73728 }
   0x7   :  { %p6704_p0 = scmp.ne.s32.totalorder %s7109_s1, %s6703_s24  ;;  %p6707_p1 = scmp.lt.u32.totalorder %s6703_s24, %s7109_s1 }
   0x9   :  { %p6709_p2 = pnand %p6707_p1, %p6704_p0 }
   0xb   :  { %6712 = shalt.err (!%p6709_p2)
}
   0xc   :  { %s6713_s29 = scalar_lea.vmem %s32_s19, 73728  ;;  %p6718_p4 = scmp.lt.s32.totalorder %s32_s19, %s32_s19 }
   0xd   :  { %p6714_p3 = scmp.ne.s32.totalorder %s32_s19, %s6713_s29  ;;  %p6719_p5 = scmp.lt.s32.totalorder %s6713_s29, %s6713_s29 }
   0xf   :  { %p6720_p6 = por %p6719_p5, %p6718_p4 }
  0x11   :  { %p6721_p7 = pnand %p6720_p6, %p6714_p3 }
  0x13   :  { %6724 = shalt.err (!%p6721_p7)
}
  0x14   :  { %s6845_s30 = smov 384   ;;  %s6846_s6 = smov 24  }
  0x15   :  { %37 = dma.hbm_to_vmem [thread:$0]  %s7109_s1, 73728, %s32_s19, [#allocation6], %s6845_s30, %s6845_s30, %s6846_s6  }
  0x16   :  { %s6725_s11 = scalar_lea.hbm %s7111_s3, 6144 }
  0x17   :  { %p6726_p8 = scmp.ne.s32.totalorder %s7111_s3, %s6725_s11  ;;  %p6729_p9 = scmp.lt.u32.totalorder %s6725_s11, %s7111_s3 }
  0x19   :  { %p6731_p10 = pnand %p6729_p9, %p6726_p8 }
  0x1b   :  { %6734 = shalt.err (!%p6731_p10)
}
  0x1c   :  { %s6735_s16 = scalar_lea.vmem %s6886_s21, 6144  ;;  %p6740_p12 = scmp.lt.s32.totalorder %s6886_s21, %s6886_s21 }
  0x1d   :  { %p6736_p11 = scmp.ne.s32.totalorder %s6886_s21, %s6735_s16  ;;  %p6741_p13 = scmp.lt.s32.totalorder %s6735_s16, %s6735_s16 }
  0x1f   :  { %p6742_p0 = por %p6741_p13, %p6740_p12 }
  0x21   :  { %p6743_p1 = pnand %p6742_p0, %p6736_p11 }
  0x23   :  { %6746 = shalt.err (!%p6743_p1)
}
  0x24   :  { %s6847_s1 = smov 64   ;;  %s6848_s17 = smov 4  }
  0x25   :  { %59 = dma.hbm_to_vmem [thread:$0]  %s7111_s3, 6144, %s6886_s21, [#allocation9], %s6847_s1, %s6847_s1, %s6848_s17  }
  0x26   :  { %s6849_s20 = smov [#allocation2]   ;;  %s6850_s23 = smov [#allocation7]  }
  0x27   :  { %s19_s22 = sshll.u32 %s6849_s20, 4  ;;  %s44_s24 = sshll.u32 %s6850_s23, 4  ;;  %s20_s22 = int_to_ptr.vmem [resolvable:$true] %s19_s22  ;;  %s45_s24 = int_to_ptr.vmem [resolvable:$true] %s44_s24 }
  0x28   :  { %s6747_s27 = scalar_lea.hbm %s7108_s0, 384 }
  0x29   :  { %p6748_p2 = scmp.ne.s32.totalorder %s7108_s0, %s6747_s27  ;;  %p6751_p3 = scmp.lt.u32.totalorder %s6747_s27, %s7108_s0 }
  0x2b   :  { %p6753_p4 = pnand %p6751_p3, %p6748_p2 }
  0x2d   :  { %6756 = shalt.err (!%p6753_p4)
}
  0x2e   :  { %s6757_s3 = scalar_lea.vmem %s20_s22, 384  ;;  %s6761_s21 = scalar_lea.vmem %s20_s22, 1536 }
  0x2f   :  { %p6758_p5 = scmp.ne.s32.totalorder %s20_s22, %s6757_s3  ;;  %p6762_p6 = scmp.lt.s32.totalorder %s20_s22, %s20_s22 }
  0x30   :  { %p6763_p7 = scmp.lt.s32.totalorder %s6761_s21, %s6757_s3 }
  0x32   :  { %p6764_p8 = por %p6763_p7, %p6762_p6 }
  0x34   :  { %p6765_p9 = pnand %p6764_p8, %p6758_p5 }
  0x36   :  { %6768 = shalt.err (!%p6765_p9)
}
  0x37   :  { %25 = dma.hbm_to_vmem [thread:$0]  %s7108_s0, 384, %s20_s22, [#allocation3], %s6845_s30, %s6845_s30, %s6846_s6  }
  0x38   :  { %s6769_s13 = scalar_lea.hbm %s7110_s2, 96 }
  0x39   :  { %p6770_p10 = scmp.ne.s32.totalorder %s7110_s2, %s6769_s13  ;;  %p6773_p11 = scmp.lt.u32.totalorder %s6769_s13, %s7110_s2 }
  0x3b   :  { %p6775_p12 = pnand %p6773_p11, %p6770_p10 }
  0x3d   :  { %6778 = shalt.err (!%p6775_p12)
}
  0x3e   :  { %s6779_s17 = scalar_lea.vmem %s45_s24, 96  ;;  %p6784_p0 = scmp.lt.s32.totalorder %s45_s24, %s45_s24 }
  0x3f   :  { %p6780_p13 = scmp.ne.s32.totalorder %s45_s24, %s6779_s17  ;;  %p6785_p1 = scmp.lt.s32.totalorder %s6779_s17, %s6779_s17 }
  0x41   :  { %p6786_p2 = por %p6785_p1, %p6784_p0 }
  0x43   :  { %p6787_p3 = pnand %p6786_p2, %p6780_p13 }
  0x45   :  { %6790 = shalt.err (!%p6787_p3)
}
  0x46   :  { %47 = dma.hbm_to_vmem [thread:$0]  %s7110_s2, 96, %s45_s24, [#allocation6]  }
  0x47   :  { %s6851_s6 = smov [#allocation10]   ;;  %s6791_s22 = scalar_lea.hbm %s7112_s4, 16 }
  0x48   :  { %s66_s18 = sshll.u32 %s6851_s6, 4  ;;  %p6792_p4 = scmp.ne.s32.totalorder %s7112_s4, %s6791_s22  ;;  %s67_s18 = int_to_ptr.vmem [resolvable:$true] %s66_s18 }
  0x49   :  { %p6795_p5 = scmp.lt.u32.totalorder %s6791_s22, %s7112_s4 }
  0x4b   :  { %p6797_p6 = pnand %p6795_p5, %p6792_p4 }
  0x4d   :  { %6800 = shalt.err (!%p6797_p6)
}
  0x4e   :  { %s6801_s28 = scalar_lea.vmem %s67_s18, 16  ;;  %s6805_s2 = scalar_lea.vmem %s67_s18, 32 }
  0x4f   :  { %p6802_p7 = scmp.ne.s32.totalorder %s67_s18, %s6801_s28  ;;  %p6806_p8 = scmp.lt.s32.totalorder %s67_s18, %s67_s18 }
  0x50   :  { %p6807_p9 = scmp.lt.s32.totalorder %s6805_s2, %s6801_s28 }
  0x52   :  { %p6808_p10 = por %p6807_p9, %p6806_p8 }
  0x54   :  { %p6809_p11 = pnand %p6808_p10, %p6802_p7 }
  0x56   :  { %6812 = shalt.err (!%p6809_p11)
}
  0x57   :  { %69 = dma.hbm_to_vmem [thread:$0]  %s7112_s4, 16, %s67_s18, [#allocation9]  }
  0x58   :  { %6835 = dma.done.wait [#allocation3], 1536  }
  0x59   :  { %6836 = vsyncadd [#allocation3], 4294965760 }
  0x5a   :  { %6837 = dma.done.wait [#allocation6], 73824  }
  0x5b   :  { %6838 = vsyncadd [#allocation6], 4294893472 }
  0x5c   :  { %6839 = dma.done.wait [#allocation9], 6160  }
  0x5d   :  { %6840 = vsyncadd [#allocation9], 4294961136  ;;  %v5773_v0 = vld [vmem:[#allocation5 + $0x4] ss:$24 sps:$4 sm:$0xff]   ;;  %v5777_v2 = vld [vmem:[#allocation5] ss:$24 sps:$4 sm:$0xff]   ;;  %v117_v40 = vlaneseq }
  0x5e   :  { %v5775_v1 = vld [vmem:[#allocation5 + $0x604] ss:$24 sps:$4 sm:$0xff]   ;;  %3730 = vmatprep.subr.bf16.mxu1 %v5773_v0  ;;  %v5778_v3 = vld [vmem:[#allocation5 + $0x600] ss:$24 sps:$4 sm:$0xff]   ;;  %v5779_v4 = vld [vmem:[#allocation5 + $0x34] ss:$24 sps:$4 sm:$0xff]  }
  0x5f   :  { %3812 = vmatprep.subr.bf16.mxu0 %v5775_v1  ;;  %3731 = vmatpush1.bf16.msra.mxu1 %v5777_v2  ;;  %v5781_v5 = vld [vmem:[#allocation5 + $0x634] ss:$24 sps:$4 sm:$0xff]   ;;  %v5783_v6 = vld [vmem:[#allocation5 + $0x30] ss:$24 sps:$4 sm:$0xff]   ;;  %v5785_v8 = vld [vmem:[#allocation5 + $0x64] ss:$24 sps:$4 sm:$0xff]  }
  0x60   :  { %3813 = vmatpush1.bf16.msra.mxu0 %v5778_v3  ;;  %3732 = vmatprep.subr.bf16.mxu1 %v5779_v4  ;;  %v5784_v7 = vld [vmem:[#allocation5 + $0x630] ss:$24 sps:$4 sm:$0xff]   ;;  %v5787_v9 = vld [vmem:[#allocation5 + $0x664] ss:$24 sps:$4 sm:$0xff]   ;;  %v5789_v10 = vld [vmem:[#allocation5 + $0x60] ss:$24 sps:$4 sm:$0xff]  }
  0x61   :  { %3814 = vmatprep.subr.bf16.mxu0 %v5781_v5  ;;  %v5790_v11 = vld [vmem:[#allocation5 + $0x660] ss:$24 sps:$4 sm:$0xff]   ;;  %v5791_v12 = vld [vmem:[#allocation5 + $0x94] ss:$24 sps:$4 sm:$0xff]   ;;  %v5795_v14 = vld [vmem:[#allocation5 + $0x90] ss:$24 sps:$4 sm:$0xff]  }
  0x62   :  { %v5793_v13 = vld [vmem:[#allocation5 + $0x694] ss:$24 sps:$4 sm:$0xff]   ;;  %v5796_v15 = vld [vmem:[#allocation5 + $0x690] ss:$24 sps:$4 sm:$0xff]   ;;  %v5797_v16 = vld [vmem:[#allocation5 + $0xc4] ss:$24 sps:$4 sm:$0xff]  }
  0x63   :  { %3733 = vmatpush1.bf16.msra.mxu1 %v5783_v6  ;;  %v5799_v17 = vld [vmem:[#allocation5 + $0x6c4] ss:$24 sps:$4 sm:$0xff]   ;;  %v5801_v18 = vld [vmem:[#allocation5 + $0xc0] ss:$24 sps:$4 sm:$0xff]   ;;  %v5803_v20 = vld [vmem:[#allocation5 + $0xf4] ss:$24 sps:$4 sm:$0xff]  }
  0x64   :  { %3815 = vmatpush1.bf16.msra.mxu0 %v5784_v7  ;;  %3734 = vmatprep.subr.bf16.mxu1 %v5785_v8  ;;  %v5802_v19 = vld [vmem:[#allocation5 + $0x6c0] ss:$24 sps:$4 sm:$0xff]   ;;  %v5805_v21 = vld [vmem:[#allocation5 + $0x6f4] ss:$24 sps:$4 sm:$0xff]   ;;  %v5807_v22 = vld [vmem:[#allocation5 + $0xf0] ss:$24 sps:$4 sm:$0xff]  }
  0x65   :  { %3816 = vmatprep.subr.bf16.mxu0 %v5787_v9  ;;  %v5808_v23 = vld [vmem:[#allocation5 + $0x6f0] ss:$24 sps:$4 sm:$0xff]   ;;  %v5809_v24 = vld [vmem:[#allocation5 + $0x124] ss:$24 sps:$4 sm:$0xff]   ;;  %v5813_v26 = vld [vmem:[#allocation5 + $0x120] ss:$24 sps:$4 sm:$0xff]  }
  0x66   :  { %v5811_v25 = vld [vmem:[#allocation5 + $0x724] ss:$24 sps:$4 sm:$0xff]   ;;  %v5814_v27 = vld [vmem:[#allocation5 + $0x720] ss:$24 sps:$4 sm:$0xff]   ;;  %v5815_v28 = vld [vmem:[#allocation5 + $0x154] ss:$24 sps:$4 sm:$0xff]  }
  0x67   :  { %3735 = vmatpush1.bf16.msra.mxu1 %v5789_v10  ;;  %v5817_v29 = vld [vmem:[#allocation5 + $0x754] ss:$24 sps:$4 sm:$0xff]   ;;  %v5819_v30 = vld [vmem:[#allocation5 + $0x150] ss:$24 sps:$4 sm:$0xff]   ;;  %v5821_v32 = vld [vmem:[#allocation5 + $0x184] ss:$24 sps:$4 sm:$0xff]  }
  0x68   :  { %3817 = vmatpush1.bf16.msra.mxu0 %v5790_v11  ;;  %3736 = vmatprep.subr.bf16.mxu1 %v5791_v12  ;;  %v5820_v31 = vld [vmem:[#allocation5 + $0x750] ss:$24 sps:$4 sm:$0xff]   ;;  %v5823_v33 = vld [vmem:[#allocation5 + $0x784] ss:$24 sps:$4 sm:$0xff]   ;;  %v5825_v34 = vld [vmem:[#allocation5 + $0x180] ss:$24 sps:$4 sm:$0xff]  }
  0x69   :  { %3818 = vmatprep.subr.bf16.mxu0 %v5793_v13  ;;  %v5826_v35 = vld [vmem:[#allocation5 + $0x780] ss:$24 sps:$4 sm:$0xff]   ;;  %v5827_v36 = vld [vmem:[#allocation5 + $0x1b4] ss:$24 sps:$4 sm:$0xff]   ;;  %v6852_v38 = vmov 1983009808  }
  0x6a   :  { %v5829_v37 = vld [vmem:[#allocation5 + $0x7b4] ss:$24 sps:$4 sm:$0xff]   ;;  %v115_v39 = vunpack.c.l.s4 %v6852_v38  ;;  %v5831_v41 = vld [vmem:[#allocation5 + $0x1b0] ss:$24 sps:$4 sm:$0xff]   ;;  %v5833_v43 = vld [vmem:[#allocation5 + $0x1e4] ss:$24 sps:$4 sm:$0xff]  }
  0x6b   :  { %3737 = vmatpush1.bf16.msra.mxu1 %v5795_v14  ;;  %v5832_v42 = vld [vmem:[#allocation5 + $0x7b0] ss:$24 sps:$4 sm:$0xff]   ;;  %v5835_v44 = vld [vmem:[#allocation5 + $0x7e4] ss:$24 sps:$4 sm:$0xff]   ;;  %v6959_v46 = vshrl.u32 %v117_v40, 7 }
  0x6c   :  { %3819 = vmatpush1.bf16.msra.mxu0 %v5796_v15  ;;  %3738 = vmatprep.subr.bf16.mxu1 %v5797_v16  ;;  %v116_v45 = vunpack.c.0.s8 %v115_v39  ;;  %v5837_v47 = vld [vmem:[#allocation5 + $0x1e0] ss:$24 sps:$4 sm:$0xff]   ;;  %v5839_v49 = vld [vmem:[#allocation5 + $0x214] ss:$24 sps:$4 sm:$0xff]   ;;  %v5843_v51 = vld [vmem:[#allocation5 + $0x210] ss:$24 sps:$4 sm:$0xff]  }
  0x6d   :  { %3820 = vmatprep.subr.bf16.mxu0 %v5799_v17  ;;  %v5838_v48 = vld [vmem:[#allocation5 + $0x7e0] ss:$24 sps:$4 sm:$0xff]   ;;  %v5841_v50 = vld [vmem:[#allocation5 + $0x814] ss:$24 sps:$4 sm:$0xff]   ;;  %v5844_v52 = vld [vmem:[#allocation5 + $0x810] ss:$24 sps:$4 sm:$0xff]  }
  0x6e   :  { %v6962_v53 = vsub.s32 %v116_v45, %v6959_v46  ;;  %v5869_v54 = vld [vmem:[#allocation2] ss:$24 sps:$4 sm:$0xff]   ;;  %v5871_v55 = vld [vmem:[#allocation2 + $0x30] ss:$24 sps:$4 sm:$0xff]   ;;  %v5845_v56 = vld [vmem:[#allocation5 + $0x244] ss:$24 sps:$4 sm:$0xff]  }
  0x6f   :  { %3739 = vmatpush1.bf16.msra.mxu1 %v5801_v18  ;;  %v5847_v57 = vld [vmem:[#allocation5 + $0x844] ss:$24 sps:$4 sm:$0xff]   ;;  %v5849_v58 = vld [vmem:[#allocation5 + $0x240] ss:$24 sps:$4 sm:$0xff]   ;;  %v5851_v0 = vld [vmem:[#allocation5 + $0x274] ss:$24 sps:$4 sm:$0xff]  }
  0x70   :  { %3821 = vmatpush1.bf16.msra.mxu0 %v5802_v19  ;;  %3740 = vmatprep.subr.bf16.mxu1 %v5803_v20  ;;  %v5850_v59 = vld [vmem:[#allocation5 + $0x840] ss:$24 sps:$4 sm:$0xff]   ;;  %v120_v60 = vrot.slane %v5869_v54, %v6962_v53  ;;  %v134_v61 = vrot.slane %v5871_v55, %v6962_v53  ;;  %v5853_v2 = vld [vmem:[#allocation5 + $0x874] ss:$24 sps:$4 sm:$0xff]   ;;  %v5855_v6 = vld [vmem:[#allocation5 + $0x270] ss:$24 sps:$4 sm:$0xff]  }
  0x71   :  { %3822 = vmatprep.subr.bf16.mxu0 %v5805_v21  ;;  %v5876_v62 = vld [vmem:[#allocation2 + $0x8] ss:$24 sps:$4 sm:$0xff]   ;;  %v5878_v63 = vld [vmem:[#allocation2 + $0x38] ss:$24 sps:$4 sm:$0xff]   ;;  %v5857_v9 = vld [vmem:[#allocation5 + $0x2a4] ss:$24 sps:$4 sm:$0xff]  }
  0x72   :  { %v143_v1 = vcombine.high %v120_v60, %v134_v61  ;;  %v156_v3 = vrot.slane %v5876_v62, %v6962_v53  ;;  %v170_v4 = vrot.slane %v5878_v63, %v6962_v53  ;;  %v5856_v7 = vld [vmem:[#allocation5 + $0x870] ss:$24 sps:$4 sm:$0xff]   ;;  %v5859_v10 = vld [vmem:[#allocation5 + $0x8a4] ss:$24 sps:$4 sm:$0xff]   ;;  %v5861_v12 = vld [vmem:[#allocation5 + $0x2a0] ss:$24 sps:$4 sm:$0xff]   ;;  %v142_v18 = vcombine.low %v120_v60, %v134_v61 }
  0x73   :  { %3741 = vmatpush1.bf16.msra.mxu1 %v5807_v22  ;;  %v5862_v13 = vld [vmem:[#allocation5 + $0x8a0] ss:$24 sps:$4 sm:$0xff]   ;;  %v5863_v14 = vld [vmem:[#allocation5 + $0x2d4] ss:$24 sps:$4 sm:$0xff]   ;;  %v5867_v16 = vld [vmem:[#allocation5 + $0x2d0] ss:$24 sps:$4 sm:$0xff]  }
  0x74   :  { %3823 = vmatpush1.bf16.msra.mxu0 %v5808_v23  ;;  %3742 = vmatprep.subr.bf16.mxu1 %v5809_v24  ;;  %v6968_v5 = vpack.c.bf16 %v143_v1, %v143_v1  ;;  %v179_v8 = vcombine.high %v156_v3, %v170_v4  ;;  %v5865_v15 = vld [vmem:[#allocation5 + $0x8d4] ss:$24 sps:$4 sm:$0xff]   ;;  %v5868_v17 = vld [vmem:[#allocation5 + $0x8d0] ss:$24 sps:$4 sm:$0xff]   ;;  %v178_v19 = vcombine.low %v156_v3, %v170_v4  ;;  %v5875_v20 = vld [vmem:[#allocation5 + $0x304] ss:$24 sps:$4 sm:$0xff]  }
  0x75   :  { %3824 = vmatprep.subr.bf16.mxu0 %v5811_v25  ;;  %v5882_v21 = vld [vmem:[#allocation5 + $0x904] ss:$24 sps:$4 sm:$0xff]   ;;  %v5873_v22 = vld [vmem:[#allocation5 + $0x300] ss:$24 sps:$4 sm:$0xff]   ;;  %v6974_v24 = vpack.c.bf16 %v142_v18, %v142_v18  ;;  %v5910_v45 = vld [vmem:[#allocation5 + $0x9f0] ss:$24 sps:$4 sm:$0xff]  }
  0x76   :  { %v6970_v11 = vpack.c.bf16 %v179_v8, %v179_v8  ;;  %3762 = vmatprep.mubr.bf16.mxu1 %v6968_v5  ;;  %v5880_v23 = vld [vmem:[#allocation5 + $0x900] ss:$24 sps:$4 sm:$0xff]   ;;  %v6976_v25 = vpack.c.bf16 %v178_v19, %v178_v19  ;;  %v5903_v38 = vld [vmem:[#allocation5 + $0x3c4] ss:$24 sps:$4 sm:$0xff]   ;;  %v5974_v55 = vld [vmem:[#allocation2 + $0x34] ss:$24 sps:$4 sm:$0xff]  }
  0x77   :  { %3743 = vmatpush1.bf16.msra.mxu1 %v5813_v26  ;;  %v5885_v26 = vld [vmem:[#allocation5 + $0x334] ss:$24 sps:$4 sm:$0xff]   ;;  %v5906_v39 = vld [vmem:[#allocation5 + $0x9c4] ss:$24 sps:$4 sm:$0xff]   ;;  %v5901_v40 = vld [vmem:[#allocation5 + $0x3c0] ss:$24 sps:$4 sm:$0xff]   ;;  %v6984_v61 = vrot.slane %v5974_v55, %v6962_v53 }
  0x78   :  { %3825 = vmatpush1.bf16.msra.mxu0 %v5814_v27  ;;  %3744 = vmatprep.subr.bf16.mxu1 %v5815_v28  ;;  %v5888_v27 = vld [vmem:[#allocation5 + $0x934] ss:$24 sps:$4 sm:$0xff]   ;;  %v5883_v28 = vld [vmem:[#allocation5 + $0x330] ss:$24 sps:$4 sm:$0xff]   ;;  %v5973_v54 = vld [vmem:[#allocation2 + $0x4] ss:$24 sps:$4 sm:$0xff]  }
  0x79   :  { %3826 = vmatprep.subr.bf16.mxu0 %v5817_v29  ;;  %3844 = vmatprep.mubr.bf16.mxu0 %v6970_v11  ;;  %v5886_v29 = vld [vmem:[#allocation5 + $0x930] ss:$24 sps:$4 sm:$0xff]   ;;  %v6981_v60 = vrot.slane %v5973_v54, %v6962_v53  ;;  %v5927_v62 = vld [vmem:[#allocation5 + $0x484] ss:$24 sps:$4 sm:$0xff]   ;;  %v5925_v4 = vld [vmem:[#allocation5 + $0x480] ss:$24 sps:$4 sm:$0xff]  }
  0x7a   :  { %v5930_v1 = vld [vmem:[#allocation5 + $0xa84] ss:$24 sps:$4 sm:$0xff]   ;;  %v5933_v8 = vld [vmem:[#allocation5 + $0x4b4] ss:$24 sps:$4 sm:$0xff]  }
  0x7b   :  { %3745 = vmatpush1.bf16.msra.mxu1 %v5819_v30  ;;  %v5891_v30 = vld [vmem:[#allocation5 + $0x364] ss:$24 sps:$4 sm:$0xff]   ;;  %v5945_v18 = vld [vmem:[#allocation5 + $0x514] ss:$24 sps:$4 sm:$0xff]  }
  0x7c   :  { %3827 = vmatpush1.bf16.msra.mxu0 %v5820_v31  ;;  %3746 = vmatprep.subr.bf16.mxu1 %v5821_v32  ;;  %v5894_v31 = vld [vmem:[#allocation5 + $0x964] ss:$24 sps:$4 sm:$0xff]   ;;  %v5889_v32 = vld [vmem:[#allocation5 + $0x360] ss:$24 sps:$4 sm:$0xff]   ;;  %v5948_v19 = vld [vmem:[#allocation5 + $0xb14] ss:$24 sps:$4 sm:$0xff]  }
  0x7d   :  { %3828 = vmatprep.subr.bf16.mxu0 %v5823_v33  ;;  %v5892_v33 = vld [vmem:[#allocation5 + $0x960] ss:$24 sps:$4 sm:$0xff]   ;;  %v5991_v54 = vld [vmem:[#allocation5 + $0xc64] ss:$24 sps:$4 sm:$0xff]  }
  0x7e   :  { %v5994_v55 = vld [vmem:[#allocation5 + $0x6c] ss:$24 sps:$4 sm:$0xff]  }
  0x7f   :  { %3747 = vmatpush1.bf16.msra.mxu1 %v5825_v34  ;;  %v5897_v34 = vld [vmem:[#allocation5 + $0x394] ss:$24 sps:$4 sm:$0xff]  }
  0x80   :  { %3829 = vmatpush1.bf16.msra.mxu0 %v5826_v35  ;;  %3748 = vmatprep.subr.bf16.mxu1 %v5827_v36  ;;  %v5900_v35 = vld [vmem:[#allocation5 + $0x994] ss:$24 sps:$4 sm:$0xff]   ;;  %v5895_v36 = vld [vmem:[#allocation5 + $0x390] ss:$24 sps:$4 sm:$0xff]  }
  0x81   :  { %3830 = vmatprep.subr.bf16.mxu0 %v5829_v37  ;;  %v5898_v37 = vld [vmem:[#allocation5 + $0x990] ss:$24 sps:$4 sm:$0xff]  }
  0x83   :  { %3749 = vmatpush1.bf16.msra.mxu1 %v5831_v41  ;;  %v5904_v41 = vld [vmem:[#allocation5 + $0x9c0] ss:$24 sps:$4 sm:$0xff]  }
  0x84   :  { %3831 = vmatpush1.bf16.msra.mxu0 %v5832_v42  ;;  %3750 = vmatprep.subr.bf16.mxu1 %v5833_v43  ;;  %v5909_v42 = vld [vmem:[#allocation5 + $0x3f4] ss:$24 sps:$4 sm:$0xff]  }
  0x85   :  { %3832 = vmatprep.subr.bf16.mxu0 %v5835_v44  ;;  %v5912_v43 = vld [vmem:[#allocation5 + $0x9f4] ss:$24 sps:$4 sm:$0xff]   ;;  %v5907_v44 = vld [vmem:[#allocation5 + $0x3f0] ss:$24 sps:$4 sm:$0xff]  }
  0x87   :  { %3751 = vmatpush1.bf16.msra.mxu1 %v5837_v47  ;;  %v5915_v47 = vld [vmem:[#allocation5 + $0x424] ss:$24 sps:$4 sm:$0xff]  }
  0x88   :  { %3833 = vmatpush1.bf16.msra.mxu0 %v5838_v48  ;;  %3752 = vmatprep.subr.bf16.mxu1 %v5839_v49  ;;  %v5918_v48 = vld [vmem:[#allocation5 + $0xa24] ss:$24 sps:$4 sm:$0xff]   ;;  %v5913_v49 = vld [vmem:[#allocation5 + $0x420] ss:$24 sps:$4 sm:$0xff]  }
  0x89   :  { %3834 = vmatprep.subr.bf16.mxu0 %v5841_v50  ;;  %v5916_v50 = vld [vmem:[#allocation5 + $0xa20] ss:$24 sps:$4 sm:$0xff]  }
  0x8b   :  { %3753 = vmatpush1.bf16.msra.mxu1 %v5843_v51  ;;  %v5921_v51 = vld [vmem:[#allocation5 + $0x454] ss:$24 sps:$4 sm:$0xff]  }
  0x8c   :  { %3835 = vmatpush1.bf16.msra.mxu0 %v5844_v52  ;;  %3754 = vmatprep.subr.bf16.mxu1 %v5845_v56  ;;  %v5924_v52 = vld [vmem:[#allocation5 + $0xa54] ss:$24 sps:$4 sm:$0xff]  }
  0x8d   :  { %3836 = vmatprep.subr.bf16.mxu0 %v5847_v57  ;;  %v5975_v56 = vld [vmem:[#allocation2 + $0xc] ss:$24 sps:$4 sm:$0xff]   ;;  %v5976_v57 = vld [vmem:[#allocation2 + $0x3c] ss:$24 sps:$4 sm:$0xff]  }
  0x8e   :  { %v6987_v63 = vrot.slane %v5975_v56, %v6962_v53  ;;  %v6073_v56 = vld [vmem:[#allocation2 + $0x10] ss:$24 sps:$4 sm:$0xff]  }
  0x8f   :  { %3755 = vmatpush1.bf16.msra.mxu1 %v5849_v58  ;;  %v5919_v58 = vld [vmem:[#allocation5 + $0x450] ss:$24 sps:$4 sm:$0xff]  }
  0x90   :  { %3837 = vmatpush1.bf16.msra.mxu0 %v5850_v59  ;;  %3756 = vmatprep.subr.bf16.mxu1 %v5851_v0  ;;  %v5922_v59 = vld [vmem:[#allocation5 + $0xa50] ss:$24 sps:$4 sm:$0xff]   ;;  %v6990_v0 = vrot.slane %v5976_v57, %v6962_v53  ;;  %v6075_v57 = vld [vmem:[#allocation2 + $0x40] ss:$24 sps:$4 sm:$0xff]  }
  0x91   :  { %3838 = vmatprep.subr.bf16.mxu0 %v5853_v2  ;;  %v145_v2 = vcombine.high %v6981_v60, %v6984_v61 }
  0x92   :  { %v181_v3 = vcombine.high %v6987_v63, %v6990_v0 }
  0x93   :  { %3757 = vmatpush1.bf16.msra.mxu1 %v5855_v6  ;;  %v5928_v6 = vld [vmem:[#allocation5 + $0xa80] ss:$24 sps:$4 sm:$0xff]  }
  0x94   :  { %3839 = vmatpush1.bf16.msra.mxu0 %v5856_v7  ;;  %3758 = vmatprep.subr.bf16.mxu1 %v5857_v9  ;;  %v6996_v7 = vpack.c.bf16 %v145_v2, %v145_v2  ;;  %v6998_v9 = vpack.c.bf16 %v181_v3, %v181_v3  ;;  %v5998_v2 = vld [vmem:[#allocation5 + $0x98] ss:$24 sps:$4 sm:$0xff]   ;;  %v6003_v3 = vld [vmem:[#allocation5 + $0xcc4] ss:$24 sps:$4 sm:$0xff]  }
  0x95   :  { %3840 = vmatprep.subr.bf16.mxu0 %v5859_v10  ;;  %v5936_v10 = vld [vmem:[#allocation5 + $0xab4] ss:$24 sps:$4 sm:$0xff]  }
  0x97   :  { %3759 = vmatpush1.bf16.msra.mxu1 %v5861_v12  ;;  %v5931_v12 = vld [vmem:[#allocation5 + $0x4b0] ss:$24 sps:$4 sm:$0xff]  }
  0x98   :  { %3841 = vmatpush1.bf16.msra.mxu0 %v5862_v13  ;;  %3760 = vmatprep.subr.bf16.mxu1 %v5863_v14  ;;  %v5934_v13 = vld [vmem:[#allocation5 + $0xab0] ss:$24 sps:$4 sm:$0xff]   ;;  %v5939_v14 = vld [vmem:[#allocation5 + $0x4e4] ss:$24 sps:$4 sm:$0xff]  }
  0x99   :  { %3842 = vmatprep.subr.bf16.mxu0 %v5865_v15  ;;  %v5942_v15 = vld [vmem:[#allocation5 + $0xae4] ss:$24 sps:$4 sm:$0xff]  }
  0x9b   :  { %3761 = vmatpush1.bf16.msra.mxu1 %v5867_v16  ;;  %v5937_v16 = vld [vmem:[#allocation5 + $0x4e0] ss:$24 sps:$4 sm:$0xff]  }
  0x9c   :  { %3843 = vmatpush1.bf16.msra.mxu0 %v5868_v17  ;;  %3771 = vmatprep.subr.bf16.mxu1 %v5875_v20  ;;  %v5940_v17 = vld [vmem:[#allocation5 + $0xae0] ss:$24 sps:$4 sm:$0xff]   ;;  %v5943_v20 = vld [vmem:[#allocation5 + $0x510] ss:$24 sps:$4 sm:$0xff]  }
  0x9d   :  { %3853 = vmatprep.subr.bf16.mxu0 %v5882_v21  ;;  %v5946_v21 = vld [vmem:[#allocation5 + $0xb10] ss:$24 sps:$4 sm:$0xff]  }
  0x9e   :  { %3763 = vmatmul.mubr.bf16.vlgmr.msra.gmra.mrb[0].mxu1 %v6974_v24 }
  0x9f   :  { %3845 = vmatmul.mubr.bf16.vlgmr.msra.gmra.mrb[0].mxu0 %v6976_v25  ;;  %3772 = vmatpush1.bf16.msra.mxu1 %v5873_v22  ;;  %v5951_v22 = vld [vmem:[#allocation5 + $0x544] ss:$24 sps:$4 sm:$0xff]  }
  0xa0   :  { %3854 = vmatpush1.bf16.msra.mxu0 %v5880_v23  ;;  %3773 = vmatprep.subr.bf16.mxu1 %v5885_v26  ;;  %v5954_v23 = vld [vmem:[#allocation5 + $0xb44] ss:$24 sps:$4 sm:$0xff]   ;;  %v5949_v26 = vld [vmem:[#allocation5 + $0x540] ss:$24 sps:$4 sm:$0xff]  }
  0xa1   :  { %3855 = vmatprep.subr.bf16.mxu0 %v5888_v27  ;;  %3803 = vmatprep.mubr.bf16.mxu1 %v6996_v7  ;;  %v5952_v27 = vld [vmem:[#allocation5 + $0xb40] ss:$24 sps:$4 sm:$0xff]  }
  0xa2   :  { %3885 = vmatprep.mubr.bf16.mxu0 %v6998_v9 }
  0xa3   :  { %3774 = vmatpush1.bf16.msra.mxu1 %v5883_v28  ;;  %v5957_v28 = vld [vmem:[#allocation5 + $0x574] ss:$24 sps:$4 sm:$0xff]  }
  0xa4   :  { %3856 = vmatpush1.bf16.msra.mxu0 %v5886_v29  ;;  %3775 = vmatprep.subr.bf16.mxu1 %v5891_v30  ;;  %v5960_v29 = vld [vmem:[#allocation5 + $0xb74] ss:$24 sps:$4 sm:$0xff]   ;;  %v5955_v30 = vld [vmem:[#allocation5 + $0x570] ss:$24 sps:$4 sm:$0xff]  }
  0xa5   :  { %3857 = vmatprep.subr.bf16.mxu0 %v5894_v31  ;;  %v5958_v31 = vld [vmem:[#allocation5 + $0xb70] ss:$24 sps:$4 sm:$0xff]  }
  0xa7   :  { %3776 = vmatpush1.bf16.msra.mxu1 %v5889_v32  ;;  %v5963_v32 = vld [vmem:[#allocation5 + $0x5a4] ss:$24 sps:$4 sm:$0xff]  }
  0xa8   :  { %3858 = vmatpush1.bf16.msra.mxu0 %v5892_v33  ;;  %3777 = vmatprep.subr.bf16.mxu1 %v5897_v34  ;;  %v5966_v33 = vld [vmem:[#allocation5 + $0xba4] ss:$24 sps:$4 sm:$0xff]   ;;  %v5961_v34 = vld [vmem:[#allocation5 + $0x5a0] ss:$24 sps:$4 sm:$0xff]  }
  0xa9   :  { %3859 = vmatprep.subr.bf16.mxu0 %v5900_v35  ;;  %v5964_v35 = vld [vmem:[#allocation5 + $0xba0] ss:$24 sps:$4 sm:$0xff]  }
  0xab   :  { %3778 = vmatpush1.bf16.msra.mxu1 %v5895_v36  ;;  %v5969_v36 = vld [vmem:[#allocation5 + $0x5d4] ss:$24 sps:$4 sm:$0xff]  }
  0xac   :  { %3860 = vmatpush1.bf16.msra.mxu0 %v5898_v37  ;;  %3779 = vmatprep.subr.bf16.mxu1 %v5903_v38  ;;  %v5972_v37 = vld [vmem:[#allocation5 + $0xbd4] ss:$24 sps:$4 sm:$0xff]   ;;  %v5967_v38 = vld [vmem:[#allocation5 + $0x5d0] ss:$24 sps:$4 sm:$0xff]  }
  0xad   :  { %3861 = vmatprep.subr.bf16.mxu0 %v5906_v39  ;;  %v5970_v39 = vld [vmem:[#allocation5 + $0xbd0] ss:$24 sps:$4 sm:$0xff]  }
  0xaf   :  { %3780 = vmatpush1.bf16.msra.mxu1 %v5901_v40  ;;  %v144_v40 = vcombine.low %v6981_v60, %v6984_v61  ;;  %v7014_v60 = vrot.slane %v6073_v56, %v6962_v53  ;;  %v5997_v61 = vld [vmem:[#allocation5 + $0xc94] ss:$24 sps:$4 sm:$0xff]  }
  0xb0   :  { %3862 = vmatpush1.bf16.msra.mxu0 %v5904_v41  ;;  %3781 = vmatprep.subr.bf16.mxu1 %v5909_v42  ;;  %v180_v41 = vcombine.low %v6987_v63, %v6990_v0  ;;  %v5979_v42 = vld [vmem:[#allocation5 + $0xc04] ss:$24 sps:$4 sm:$0xff]   ;;  %v7017_v63 = vrot.slane %v6075_v57, %v6962_v53  ;;  %v6173_v56 = vld [vmem:[#allocation2 + $0x14] ss:$24 sps:$4 sm:$0xff]  }
  0xb1   :  { %3863 = vmatprep.subr.bf16.mxu0 %v5912_v43  ;;  %v5982_v43 = vld [vmem:[#allocation5 + $0xc] ss:$24 sps:$4 sm:$0xff]  }
  0xb2   :  { %v215_v0 = vcombine.high %v7014_v60, %v7017_v63  ;;  %v6174_v57 = vld [vmem:[#allocation2 + $0x44] ss:$24 sps:$4 sm:$0xff]  }
  0xb3   :  { %3782 = vmatpush1.bf16.msra.mxu1 %v5907_v44  ;;  %v5977_v44 = vld [vmem:[#allocation5 + $0xc00] ss:$24 sps:$4 sm:$0xff]  }
  0xb4   :  { %3864 = vmatpush1.bf16.msra.mxu0 %v5910_v45  ;;  %3783 = vmatprep.subr.bf16.mxu1 %v5915_v47  ;;  %v5980_v45 = vld [vmem:[#allocation5 + $0x8] ss:$24 sps:$4 sm:$0xff]   ;;  %v7006_v47 = vpack.c.bf16 %v144_v40, %v144_v40 }
  0xb5   :  { %3865 = vmatprep.subr.bf16.mxu0 %v5918_v48  ;;  %v7008_v48 = vpack.c.bf16 %v180_v41, %v180_v41  ;;  %v6043_v40 = vld [vmem:[#allocation5 + $0xe10] ss:$24 sps:$4 sm:$0xff]  }
  0xb6   :  { %v6046_v41 = vld [vmem:[#allocation5 + $0x218] ss:$24 sps:$4 sm:$0xff]  }
  0xb7   :  { %3784 = vmatpush1.bf16.msra.mxu1 %v5913_v49  ;;  %v5985_v49 = vld [vmem:[#allocation5 + $0xc34] ss:$24 sps:$4 sm:$0xff]  }
  0xb8   :  { %3866 = vmatpush1.bf16.msra.mxu0 %v5916_v50  ;;  %3785 = vmatprep.subr.bf16.mxu1 %v5921_v51  ;;  %v5988_v50 = vld [vmem:[#allocation5 + $0x3c] ss:$24 sps:$4 sm:$0xff]   ;;  %v5983_v51 = vld [vmem:[#allocation5 + $0xc30] ss:$24 sps:$4 sm:$0xff]  }
  0xb9   :  { %3867 = vmatprep.subr.bf16.mxu0 %v5924_v52  ;;  %v5986_v52 = vld [vmem:[#allocation5 + $0x38] ss:$24 sps:$4 sm:$0xff]  }
  0xbb   :  { %3786 = vmatpush1.bf16.msra.mxu1 %v5919_v58  ;;  %v5989_v58 = vld [vmem:[#allocation5 + $0xc60] ss:$24 sps:$4 sm:$0xff]  }
  0xbc   :  { %3868 = vmatpush1.bf16.msra.mxu0 %v5922_v59  ;;  %3787 = vmatprep.subr.bf16.mxu1 %v5927_v62  ;;  %v5992_v59 = vld [vmem:[#allocation5 + $0x68] ss:$24 sps:$4 sm:$0xff]   ;;  %v6000_v62 = vld [vmem:[#allocation5 + $0x9c] ss:$24 sps:$4 sm:$0xff]  }
  0xbd   :  { %3869 = vmatprep.subr.bf16.mxu0 %v5930_v1  ;;  %v5995_v1 = vld [vmem:[#allocation5 + $0xc90] ss:$24 sps:$4 sm:$0xff]  }
  0xbf   :  { %3788 = vmatpush1.bf16.msra.mxu1 %v5925_v4  ;;  %v6006_v4 = vld [vmem:[#allocation5 + $0xcc] ss:$24 sps:$4 sm:$0xff]  }
  0xc0   :  { %3870 = vmatpush1.bf16.msra.mxu0 %v5928_v6  ;;  %3789 = vmatprep.subr.bf16.mxu1 %v5933_v8  ;;  %v7021_v6 = vpack.c.bf16 %v215_v0, %v215_v0  ;;  %v6001_v8 = vld [vmem:[#allocation5 + $0xcc0] ss:$24 sps:$4 sm:$0xff]   ;;  %v7025_v0 = vrot.slane %v6173_v56, %v6962_v53  ;;  %v6139_v56 = vld [vmem:[#allocation5 + $0x10e4] ss:$24 sps:$4 sm:$0xff]  }
  0xc1   :  { %3871 = vmatprep.subr.bf16.mxu0 %v5936_v10  ;;  %v6004_v10 = vld [vmem:[#allocation5 + $0xc8] ss:$24 sps:$4 sm:$0xff]  }
  0xc3   :  { %3790 = vmatpush1.bf16.msra.mxu1 %v5931_v12  ;;  %v6009_v12 = vld [vmem:[#allocation5 + $0xcf4] ss:$24 sps:$4 sm:$0xff]  }
  0xc4   :  { %3872 = vmatpush1.bf16.msra.mxu0 %v5934_v13  ;;  %3791 = vmatprep.subr.bf16.mxu1 %v5939_v14  ;;  %v6012_v13 = vld [vmem:[#allocation5 + $0xfc] ss:$24 sps:$4 sm:$0xff]   ;;  %v6007_v14 = vld [vmem:[#allocation5 + $0xcf0] ss:$24 sps:$4 sm:$0xff]  }
  0xc5   :  { %3873 = vmatprep.subr.bf16.mxu0 %v5942_v15  ;;  %v6010_v15 = vld [vmem:[#allocation5 + $0xf8] ss:$24 sps:$4 sm:$0xff]  }
  0xc7   :  { %3792 = vmatpush1.bf16.msra.mxu1 %v5937_v16  ;;  %v6015_v16 = vld [vmem:[#allocation5 + $0xd24] ss:$24 sps:$4 sm:$0xff]  }
  0xc8   :  { %3874 = vmatpush1.bf16.msra.mxu0 %v5940_v17  ;;  %3793 = vmatprep.subr.bf16.mxu1 %v5945_v18  ;;  %v6018_v17 = vld [vmem:[#allocation5 + $0x12c] ss:$24 sps:$4 sm:$0xff]   ;;  %v6013_v18 = vld [vmem:[#allocation5 + $0xd20] ss:$24 sps:$4 sm:$0xff]  }
  0xc9   :  { %3875 = vmatprep.subr.bf16.mxu0 %v5948_v19  ;;  %v6016_v19 = vld [vmem:[#allocation5 + $0x128] ss:$24 sps:$4 sm:$0xff]  }
  0xcb   :  { %3794 = vmatpush1.bf16.msra.mxu1 %v5943_v20  ;;  %v6021_v20 = vld [vmem:[#allocation5 + $0xd54] ss:$24 sps:$4 sm:$0xff]  }
  0xcc   :  { %3876 = vmatpush1.bf16.msra.mxu0 %v5946_v21  ;;  %3795 = vmatprep.subr.bf16.mxu1 %v5951_v22  ;;  %v6024_v21 = vld [vmem:[#allocation5 + $0x15c] ss:$24 sps:$4 sm:$0xff]   ;;  %v6019_v22 = vld [vmem:[#allocation5 + $0xd50] ss:$24 sps:$4 sm:$0xff]  }
  0xcd   :  { %3877 = vmatprep.subr.bf16.mxu0 %v5954_v23  ;;  %v6022_v23 = vld [vmem:[#allocation5 + $0x158] ss:$24 sps:$4 sm:$0xff]  }
  0xcf   :  { %3796 = vmatpush1.bf16.msra.mxu1 %v5949_v26  ;;  %v6027_v26 = vld [vmem:[#allocation5 + $0xd84] ss:$24 sps:$4 sm:$0xff]  }
  0xd0   :  { %3878 = vmatpush1.bf16.msra.mxu0 %v5952_v27  ;;  %3797 = vmatprep.subr.bf16.mxu1 %v5957_v28  ;;  %v6030_v27 = vld [vmem:[#allocation5 + $0x18c] ss:$24 sps:$4 sm:$0xff]   ;;  %v6025_v28 = vld [vmem:[#allocation5 + $0xd80] ss:$24 sps:$4 sm:$0xff]  }
  0xd1   :  { %3879 = vmatprep.subr.bf16.mxu0 %v5960_v29  ;;  %v6028_v29 = vld [vmem:[#allocation5 + $0x188] ss:$24 sps:$4 sm:$0xff]  }
  0xd3   :  { %3798 = vmatpush1.bf16.msra.mxu1 %v5955_v30  ;;  %v6033_v30 = vld [vmem:[#allocation5 + $0xdb4] ss:$24 sps:$4 sm:$0xff]  }
  0xd4   :  { %3880 = vmatpush1.bf16.msra.mxu0 %v5958_v31  ;;  %3799 = vmatprep.subr.bf16.mxu1 %v5963_v32  ;;  %v6036_v31 = vld [vmem:[#allocation5 + $0x1bc] ss:$24 sps:$4 sm:$0xff]   ;;  %v6031_v32 = vld [vmem:[#allocation5 + $0xdb0] ss:$24 sps:$4 sm:$0xff]  }
  0xd5   :  { %3881 = vmatprep.subr.bf16.mxu0 %v5966_v33  ;;  %v6034_v33 = vld [vmem:[#allocation5 + $0x1b8] ss:$24 sps:$4 sm:$0xff]  }
  0xd7   :  { %3800 = vmatpush1.bf16.msra.mxu1 %v5961_v34  ;;  %v6039_v34 = vld [vmem:[#allocation5 + $0xde4] ss:$24 sps:$4 sm:$0xff]  }
  0xd8   :  { %3882 = vmatpush1.bf16.msra.mxu0 %v5964_v35  ;;  %3801 = vmatprep.subr.bf16.mxu1 %v5969_v36  ;;  %v6042_v35 = vld [vmem:[#allocation5 + $0x1ec] ss:$24 sps:$4 sm:$0xff]   ;;  %v6037_v36 = vld [vmem:[#allocation5 + $0xde0] ss:$24 sps:$4 sm:$0xff]  }
  0xd9   :  { %3883 = vmatprep.subr.bf16.mxu0 %v5972_v37  ;;  %v6040_v37 = vld [vmem:[#allocation5 + $0x1e8] ss:$24 sps:$4 sm:$0xff]  }
  0xdb   :  { %3802 = vmatpush1.bf16.msra.mxu1 %v5967_v38  ;;  %v6045_v38 = vld [vmem:[#allocation5 + $0xe14] ss:$24 sps:$4 sm:$0xff]  }
  0xdc   :  { %3884 = vmatpush1.bf16.msra.mxu0 %v5970_v39  ;;  %3976 = vmatprep.subr.bf16.mxu1 %v5982_v43  ;;  %v6048_v39 = vld [vmem:[#allocation5 + $0x21c] ss:$24 sps:$4 sm:$0xff]   ;;  %v6054_v43 = vld [vmem:[#allocation5 + $0x24c] ss:$24 sps:$4 sm:$0xff]  }
  0xdd   :  { %3894 = vmatprep.subr.bf16.mxu0 %v5979_v42  ;;  %v6051_v42 = vld [vmem:[#allocation5 + $0xe44] ss:$24 sps:$4 sm:$0xff]  }
  0xde   :  { %3804 = vmatmul.mubr.bf16.vlgmr.msra.gmra.mrb[0].mxu1 %v7006_v47 }
  0xdf   :  { %3886 = vmatmul.mubr.bf16.vlgmr.msra.gmra.mrb[0].mxu0 %v7008_v48  ;;  %3977 = vmatpush1.bf16.msra.mxu1 %v5980_v45  ;;  %v6052_v45 = vld [vmem:[#allocation5 + $0x248] ss:$24 sps:$4 sm:$0xff]  }
  0xe0   :  { %3895 = vmatpush1.bf16.msra.mxu0 %v5977_v44  ;;  %3978 = vmatprep.subr.bf16.mxu1 %v5988_v50  ;;  %v6049_v44 = vld [vmem:[#allocation5 + $0xe40] ss:$24 sps:$4 sm:$0xff]   ;;  %v6060_v50 = vld [vmem:[#allocation5 + $0x27c] ss:$24 sps:$4 sm:$0xff]  }
  0xe1   :  { %3896 = vmatprep.subr.bf16.mxu0 %v5985_v49  ;;  %4008 = vmatprep.mubr.bf16.mxu1 %v6968_v5  ;;  %v6057_v49 = vld [vmem:[#allocation5 + $0xe74] ss:$24 sps:$4 sm:$0xff]  }
  0xe2   :  { %3926 = vmatprep.mubr.bf16.mxu0 %v7021_v6 }
  0xe3   :  { %3979 = vmatpush1.bf16.msra.mxu1 %v5986_v52  ;;  %v6058_v52 = vld [vmem:[#allocation5 + $0x278] ss:$24 sps:$4 sm:$0xff]  }
  0xe4   :  { %3897 = vmatpush1.bf16.msra.mxu0 %v5983_v51  ;;  %3980 = vmatprep.subr.bf16.mxu1 %v5994_v55  ;;  %v6055_v51 = vld [vmem:[#allocation5 + $0xe70] ss:$24 sps:$4 sm:$0xff]   ;;  %v6066_v55 = vld [vmem:[#allocation5 + $0x2ac] ss:$24 sps:$4 sm:$0xff]  }
  0xe5   :  { %3898 = vmatprep.subr.bf16.mxu0 %v5991_v54  ;;  %v6063_v54 = vld [vmem:[#allocation5 + $0xea4] ss:$24 sps:$4 sm:$0xff]  }
  0xe7   :  { %3981 = vmatpush1.bf16.msra.mxu1 %v5992_v59  ;;  %v6064_v59 = vld [vmem:[#allocation5 + $0x2a8] ss:$24 sps:$4 sm:$0xff]  }
  0xe8   :  { %3899 = vmatpush1.bf16.msra.mxu0 %v5989_v58  ;;  %3982 = vmatprep.subr.bf16.mxu1 %v6000_v62  ;;  %v6061_v58 = vld [vmem:[#allocation5 + $0xea0] ss:$24 sps:$4 sm:$0xff]   ;;  %v6072_v62 = vld [vmem:[#allocation5 + $0x2dc] ss:$24 sps:$4 sm:$0xff]  }
  0xe9   :  { %3900 = vmatprep.subr.bf16.mxu0 %v5997_v61  ;;  %v6069_v61 = vld [vmem:[#allocation5 + $0xed4] ss:$24 sps:$4 sm:$0xff]  }
  0xeb   :  { %3983 = vmatpush1.bf16.msra.mxu1 %v5998_v2  ;;  %v6067_v2 = vld [vmem:[#allocation5 + $0xed0] ss:$24 sps:$4 sm:$0xff]  }
  0xec   :  { %3901 = vmatpush1.bf16.msra.mxu0 %v5995_v1  ;;  %3984 = vmatprep.subr.bf16.mxu1 %v6006_v4  ;;  %v7028_v1 = vrot.slane %v6174_v57, %v6962_v53  ;;  %v214_v4 = vcombine.low %v7014_v60, %v7017_v63  ;;  %v6085_v53 = vld [vmem:[#allocation5 + $0xf34] ss:$24 sps:$4 sm:$0xff]   ;;  %v6083_v63 = vld [vmem:[#allocation5 + $0xf30] ss:$24 sps:$4 sm:$0xff]  }
  0xed   :  { %3902 = vmatprep.subr.bf16.mxu0 %v6003_v3  ;;  %v6070_v3 = vld [vmem:[#allocation5 + $0x2d8] ss:$24 sps:$4 sm:$0xff]   ;;  %v6142_v57 = vld [vmem:[#allocation5 + $0x4ec] ss:$24 sps:$4 sm:$0xff]  }
  0xef   :  { %3985 = vmatpush1.bf16.msra.mxu1 %v6004_v10  ;;  %v6082_v10 = vld [vmem:[#allocation5 + $0x30c] ss:$24 sps:$4 sm:$0xff]  }
  0xf0   :  { %3903 = vmatpush1.bf16.msra.mxu0 %v6001_v8  ;;  %3986 = vmatprep.subr.bf16.mxu1 %v6012_v13  ;;  %v6079_v8 = vld [vmem:[#allocation5 + $0xf04] ss:$24 sps:$4 sm:$0xff]   ;;  %v6077_v13 = vld [vmem:[#allocation5 + $0xf00] ss:$24 sps:$4 sm:$0xff]  }
  0xf1   :  { %3904 = vmatprep.subr.bf16.mxu0 %v6009_v12  ;;  %v217_v12 = vcombine.high %v7025_v0, %v7028_v1 }
  0xf3   :  { %3987 = vmatpush1.bf16.msra.mxu1 %v6010_v15  ;;  %v7034_v15 = vpack.c.bf16 %v214_v4, %v214_v4  ;;  %v7036_v60 = vpack.c.bf16 %v217_v12, %v217_v12  ;;  %v6151_v4 = vld [vmem:[#allocation5 + $0x1144] ss:$24 sps:$4 sm:$0xff]   ;;  %v6152_v12 = vld [vmem:[#allocation5 + $0x548] ss:$24 sps:$4 sm:$0xff]  }
  0xf4   :  { %3905 = vmatpush1.bf16.msra.mxu0 %v6007_v14  ;;  %3988 = vmatprep.subr.bf16.mxu1 %v6018_v17  ;;  %v6080_v14 = vld [vmem:[#allocation5 + $0x308] ss:$24 sps:$4 sm:$0xff]   ;;  %v6086_v17 = vld [vmem:[#allocation5 + $0x338] ss:$24 sps:$4 sm:$0xff]  }
  0xf5   :  { %3906 = vmatprep.subr.bf16.mxu0 %v6015_v16  ;;  %v6088_v16 = vld [vmem:[#allocation5 + $0x33c] ss:$24 sps:$4 sm:$0xff]  }
  0xf7   :  { %3989 = vmatpush1.bf16.msra.mxu1 %v6016_v19  ;;  %v6094_v19 = vld [vmem:[#allocation5 + $0x36c] ss:$24 sps:$4 sm:$0xff]  }
  0xf8   :  { %3907 = vmatpush1.bf16.msra.mxu0 %v6013_v18  ;;  %3990 = vmatprep.subr.bf16.mxu1 %v6024_v21  ;;  %v6091_v18 = vld [vmem:[#allocation5 + $0xf64] ss:$24 sps:$4 sm:$0xff]   ;;  %v6092_v21 = vld [vmem:[#allocation5 + $0x368] ss:$24 sps:$4 sm:$0xff]  }
  0xf9   :  { %3908 = vmatprep.subr.bf16.mxu0 %v6021_v20  ;;  %v6089_v20 = vld [vmem:[#allocation5 + $0xf60] ss:$24 sps:$4 sm:$0xff]  }
  0xfb   :  { %3991 = vmatpush1.bf16.msra.mxu1 %v6022_v23  ;;  %v6100_v23 = vld [vmem:[#allocation5 + $0x39c] ss:$24 sps:$4 sm:$0xff]  }
  0xfc   :  { %3909 = vmatpush1.bf16.msra.mxu0 %v6019_v22  ;;  %3992 = vmatprep.subr.bf16.mxu1 %v6030_v27  ;;  %v6097_v22 = vld [vmem:[#allocation5 + $0xf94] ss:$24 sps:$4 sm:$0xff]   ;;  %v6098_v27 = vld [vmem:[#allocation5 + $0x398] ss:$24 sps:$4 sm:$0xff]  }
  0xfd   :  { %3910 = vmatprep.subr.bf16.mxu0 %v6027_v26  ;;  %v6095_v26 = vld [vmem:[#allocation5 + $0xf90] ss:$24 sps:$4 sm:$0xff]  }
  0xff   :  { %3993 = vmatpush1.bf16.msra.mxu1 %v6028_v29  ;;  %v6106_v29 = vld [vmem:[#allocation5 + $0x3cc] ss:$24 sps:$4 sm:$0xff]  }
 0x100   :  { %3911 = vmatpush1.bf16.msra.mxu0 %v6025_v28  ;;  %3994 = vmatprep.subr.bf16.mxu1 %v6036_v31  ;;  %v6103_v28 = vld [vmem:[#allocation5 + $0xfc4] ss:$24 sps:$4 sm:$0xff]   ;;  %v6104_v31 = vld [vmem:[#allocation5 + $0x3c8] ss:$24 sps:$4 sm:$0xff]  }
 0x101   :  { %3912 = vmatprep.subr.bf16.mxu0 %v6033_v30  ;;  %v6101_v30 = vld [vmem:[#allocation5 + $0xfc0] ss:$24 sps:$4 sm:$0xff]  }
 0x103   :  { %3995 = vmatpush1.bf16.msra.mxu1 %v6034_v33  ;;  %v6112_v33 = vld [vmem:[#allocation5 + $0x3fc] ss:$24 sps:$4 sm:$0xff]  }
 0x104   :  { %3913 = vmatpush1.bf16.msra.mxu0 %v6031_v32  ;;  %3996 = vmatprep.subr.bf16.mxu1 %v6042_v35  ;;  %v6109_v32 = vld [vmem:[#allocation5 + $0xff4] ss:$24 sps:$4 sm:$0xff]   ;;  %v6110_v35 = vld [vmem:[#allocation5 + $0x3f8] ss:$24 sps:$4 sm:$0xff]  }
 0x105   :  { %3914 = vmatprep.subr.bf16.mxu0 %v6039_v34  ;;  %v6107_v34 = vld [vmem:[#allocation5 + $0xff0] ss:$24 sps:$4 sm:$0xff]  }
 0x107   :  { %3997 = vmatpush1.bf16.msra.mxu1 %v6040_v37  ;;  %v6118_v37 = vld [vmem:[#allocation5 + $0x42c] ss:$24 sps:$4 sm:$0xff]  }
 0x108   :  { %3915 = vmatpush1.bf16.msra.mxu0 %v6037_v36  ;;  %3998 = vmatprep.subr.bf16.mxu1 %v6048_v39  ;;  %v6115_v36 = vld [vmem:[#allocation5 + $0x1024] ss:$24 sps:$4 sm:$0xff]   ;;  %v6116_v39 = vld [vmem:[#allocation5 + $0x428] ss:$24 sps:$4 sm:$0xff]  }
 0x109   :  { %3916 = vmatprep.subr.bf16.mxu0 %v6045_v38  ;;  %v6113_v38 = vld [vmem:[#allocation5 + $0x1020] ss:$24 sps:$4 sm:$0xff]  }
 0x10b   :  { %3999 = vmatpush1.bf16.msra.mxu1 %v6046_v41  ;;  %v6124_v41 = vld [vmem:[#allocation5 + $0x45c] ss:$24 sps:$4 sm:$0xff]  }
 0x10c   :  { %3917 = vmatpush1.bf16.msra.mxu0 %v6043_v40  ;;  %4000 = vmatprep.subr.bf16.mxu1 %v6054_v43  ;;  %v6121_v40 = vld [vmem:[#allocation5 + $0x1054] ss:$24 sps:$4 sm:$0xff]   ;;  %v6122_v43 = vld [vmem:[#allocation5 + $0x458] ss:$24 sps:$4 sm:$0xff]  }
 0x10d   :  { %3918 = vmatprep.subr.bf16.mxu0 %v6051_v42  ;;  %v6119_v42 = vld [vmem:[#allocation5 + $0x1050] ss:$24 sps:$4 sm:$0xff]  }
 0x10f   :  { %4001 = vmatpush1.bf16.msra.mxu1 %v6052_v45  ;;  %v6130_v45 = vld [vmem:[#allocation5 + $0x48c] ss:$24 sps:$4 sm:$0xff]  }
 0x110   :  { %3919 = vmatpush1.bf16.msra.mxu0 %v6049_v44  ;;  %4002 = vmatprep.subr.bf16.mxu1 %v6060_v50  ;;  %v6127_v44 = vld [vmem:[#allocation5 + $0x1084] ss:$24 sps:$4 sm:$0xff]   ;;  %v6128_v50 = vld [vmem:[#allocation5 + $0x488] ss:$24 sps:$4 sm:$0xff]  }
 0x111   :  { %3920 = vmatprep.subr.bf16.mxu0 %v6057_v49  ;;  %v6125_v49 = vld [vmem:[#allocation5 + $0x1080] ss:$24 sps:$4 sm:$0xff]  }
 0x113   :  { %4003 = vmatpush1.bf16.msra.mxu1 %v6058_v52  ;;  %v6136_v52 = vld [vmem:[#allocation5 + $0x4bc] ss:$24 sps:$4 sm:$0xff]  }
 0x114   :  { %3921 = vmatpush1.bf16.msra.mxu0 %v6055_v51  ;;  %4004 = vmatprep.subr.bf16.mxu1 %v6066_v55  ;;  %v6133_v51 = vld [vmem:[#allocation5 + $0x10b4] ss:$24 sps:$4 sm:$0xff]   ;;  %v6134_v55 = vld [vmem:[#allocation5 + $0x4b8] ss:$24 sps:$4 sm:$0xff]  }
 0x115   :  { %3922 = vmatprep.subr.bf16.mxu0 %v6063_v54  ;;  %v6131_v54 = vld [vmem:[#allocation5 + $0x10b0] ss:$24 sps:$4 sm:$0xff]  }
 0x117   :  { %4005 = vmatpush1.bf16.msra.mxu1 %v6064_v59  ;;  %v6140_v59 = vld [vmem:[#allocation5 + $0x4e8] ss:$24 sps:$4 sm:$0xff]  }
 0x118   :  { %3923 = vmatpush1.bf16.msra.mxu0 %v6061_v58  ;;  %4006 = vmatprep.subr.bf16.mxu1 %v6072_v62  ;;  %v6137_v58 = vld [vmem:[#allocation5 + $0x10e0] ss:$24 sps:$4 sm:$0xff]   ;;  %v6148_v62 = vld [vmem:[#allocation5 + $0x51c] ss:$24 sps:$4 sm:$0xff]  }
 0x119   :  { %3924 = vmatprep.subr.bf16.mxu0 %v6069_v61  ;;  %v6145_v61 = vld [vmem:[#allocation5 + $0x1114] ss:$24 sps:$4 sm:$0xff]  }
 0x11b   :  { %4007 = vmatpush1.bf16.msra.mxu1 %v6070_v3  ;;  %v6146_v3 = vld [vmem:[#allocation5 + $0x518] ss:$24 sps:$4 sm:$0xff]  }
 0x11c   :  { %3925 = vmatpush1.bf16.msra.mxu0 %v6067_v2  ;;  %4017 = vmatprep.subr.bf16.mxu1 %v6082_v10  ;;  %v6143_v2 = vld [vmem:[#allocation5 + $0x1110] ss:$24 sps:$4 sm:$0xff]   ;;  %v6149_v10 = vld [vmem:[#allocation5 + $0x1140] ss:$24 sps:$4 sm:$0xff]  }
 0x11d   :  { %3935 = vmatprep.subr.bf16.mxu0 %v6079_v8  ;;  %v6154_v8 = vld [vmem:[#allocation5 + $0x54c] ss:$24 sps:$4 sm:$0xff]  }
 0x11e   :  { %4009 = vmatmul.mubr.bf16.vlgmr.msra.gmra.mrb[4].mxu1 %v6974_v24 }
 0x11f   :  { %3927 = vmatmul.mubr.bf16.vlgmr.msra.gmra.mrb[0].mxu0 %v7034_v15  ;;  %4018 = vmatpush1.bf16.msra.mxu1 %v6080_v14  ;;  %v6160_v14 = vld [vmem:[#allocation5 + $0x57c] ss:$24 sps:$4 sm:$0xff]  }
 0x120   :  { %3936 = vmatpush1.bf16.msra.mxu0 %v6077_v13  ;;  %4019 = vmatprep.subr.bf16.mxu1 %v6088_v16  ;;  %v6157_v13 = vld [vmem:[#allocation5 + $0x1174] ss:$24 sps:$4 sm:$0xff]   ;;  %v6158_v16 = vld [vmem:[#allocation5 + $0x578] ss:$24 sps:$4 sm:$0xff]  }
 0x121   :  { %3937 = vmatprep.subr.bf16.mxu0 %v6085_v53  ;;  %3967 = vmatprep.mubr.bf16.mxu0 %v7036_v60  ;;  %v6155_v53 = vld [vmem:[#allocation5 + $0x1170] ss:$24 sps:$4 sm:$0xff]  }
 0x122   :  { %4049 = vmatprep.mubr.bf16.mxu1 %v6996_v7 }
 0x123   :  { %4020 = vmatpush1.bf16.msra.mxu1 %v6086_v17  ;;  %v6166_v17 = vld [vmem:[#allocation5 + $0x5ac] ss:$24 sps:$4 sm:$0xff]  }
 0x124   :  { %3938 = vmatpush1.bf16.msra.mxu0 %v6083_v63  ;;  %4021 = vmatprep.subr.bf16.mxu1 %v6094_v19  ;;  %v6163_v63 = vld [vmem:[#allocation5 + $0x11a4] ss:$24 sps:$4 sm:$0xff]   ;;  %v6164_v19 = vld [vmem:[#allocation5 + $0x5a8] ss:$24 sps:$4 sm:$0xff]  }
 0x125   :  { %3939 = vmatprep.subr.bf16.mxu0 %v6091_v18  ;;  %v6161_v18 = vld [vmem:[#allocation5 + $0x11a0] ss:$24 sps:$4 sm:$0xff]  }
 0x127   :  { %4022 = vmatpush1.bf16.msra.mxu1 %v6092_v21  ;;  %v6172_v21 = vld [vmem:[#allocation5 + $0x5dc] ss:$24 sps:$4 sm:$0xff]  }
 0x128   :  { %3940 = vmatpush1.bf16.msra.mxu0 %v6089_v20  ;;  %4023 = vmatprep.subr.bf16.mxu1 %v6100_v23  ;;  %v6169_v20 = vld [vmem:[#allocation5 + $0x11d4] ss:$24 sps:$4 sm:$0xff]   ;;  %v6170_v23 = vld [vmem:[#allocation5 + $0x5d8] ss:$24 sps:$4 sm:$0xff]  }
 0x129   :  { %3941 = vmatprep.subr.bf16.mxu0 %v6097_v22  ;;  %v6167_v22 = vld [vmem:[#allocation5 + $0x11d0] ss:$24 sps:$4 sm:$0xff]  }
 0x12b   :  { %4024 = vmatpush1.bf16.msra.mxu1 %v6098_v27  ;;  %v6177_v27 = vld [vmem:[#allocation5 + $0x60c] ss:$24 sps:$4 sm:$0xff]  }
 0x12c   :  { %3942 = vmatpush1.bf16.msra.mxu0 %v6095_v26  ;;  %4025 = vmatprep.subr.bf16.mxu1 %v6106_v29  ;;  %v216_v26 = vcombine.low %v7025_v0, %v7028_v1  ;;  %v6181_v0 = vld [vmem:[#allocation5 + $0x638] ss:$24 sps:$4 sm:$0xff]  }
 0x12d   :  { %3943 = vmatprep.subr.bf16.mxu0 %v6103_v28  ;;  %v6180_v28 = vld [vmem:[#allocation5 + $0x14] ss:$24 sps:$4 sm:$0xff]   ;;  %v6184_v1 = vld [vmem:[#allocation5 + $0x40] ss:$24 sps:$4 sm:$0xff]  }
 0x12e   :  { %v7044_v29 = vpack.c.bf16 %v216_v26, %v216_v26  ;;  %v6250_v26 = vld [vmem:[#allocation5 + $0x250] ss:$24 sps:$4 sm:$0xff]  }
 0x12f   :  { %4026 = vmatpush1.bf16.msra.mxu1 %v6104_v31  ;;  %v6178_v31 = vld [vmem:[#allocation5 + $0x10] ss:$24 sps:$4 sm:$0xff]  }
 0x130   :  { %3944 = vmatpush1.bf16.msra.mxu0 %v6101_v30  ;;  %4027 = vmatprep.subr.bf16.mxu1 %v6112_v33  ;;  %v6175_v30 = vld [vmem:[#allocation5 + $0x608] ss:$24 sps:$4 sm:$0xff]   ;;  %v6186_v33 = vld [vmem:[#allocation5 + $0x44] ss:$24 sps:$4 sm:$0xff]  }
 0x131   :  { %3945 = vmatprep.subr.bf16.mxu0 %v6109_v32  ;;  %v6183_v32 = vld [vmem:[#allocation5 + $0x63c] ss:$24 sps:$4 sm:$0xff]  }
 0x133   :  { %4028 = vmatpush1.bf16.msra.mxu1 %v6110_v35  ;;  %v6192_v35 = vld [vmem:[#allocation5 + $0x74] ss:$24 sps:$4 sm:$0xff]  }
 0x134   :  { %3946 = vmatpush1.bf16.msra.mxu0 %v6107_v34  ;;  %4029 = vmatprep.subr.bf16.mxu1 %v6118_v37  ;;  %v6189_v34 = vld [vmem:[#allocation5 + $0x66c] ss:$24 sps:$4 sm:$0xff]   ;;  %v6190_v37 = vld [vmem:[#allocation5 + $0x70] ss:$24 sps:$4 sm:$0xff]  }
 0x135   :  { %3947 = vmatprep.subr.bf16.mxu0 %v6115_v36  ;;  %v6187_v36 = vld [vmem:[#allocation5 + $0x668] ss:$24 sps:$4 sm:$0xff]  }
 0x137   :  { %4030 = vmatpush1.bf16.msra.mxu1 %v6116_v39  ;;  %v6198_v39 = vld [vmem:[#allocation5 + $0xa4] ss:$24 sps:$4 sm:$0xff]  }
 0x138   :  { %3948 = vmatpush1.bf16.msra.mxu0 %v6113_v38  ;;  %4031 = vmatprep.subr.bf16.mxu1 %v6124_v41  ;;  %v6195_v38 = vld [vmem:[#allocation5 + $0x69c] ss:$24 sps:$4 sm:$0xff]   ;;  %v6196_v41 = vld [vmem:[#allocation5 + $0xa0] ss:$24 sps:$4 sm:$0xff]  }
 0x139   :  { %3949 = vmatprep.subr.bf16.mxu0 %v6121_v40  ;;  %v6193_v40 = vld [vmem:[#allocation5 + $0x698] ss:$24 sps:$4 sm:$0xff]  }
 0x13b   :  { %4032 = vmatpush1.bf16.msra.mxu1 %v6122_v43  ;;  %v6204_v43 = vld [vmem:[#allocation5 + $0xd4] ss:$24 sps:$4 sm:$0xff]  }
 0x13c   :  { %3950 = vmatpush1.bf16.msra.mxu0 %v6119_v42  ;;  %4033 = vmatprep.subr.bf16.mxu1 %v6130_v45  ;;  %v6201_v42 = vld [vmem:[#allocation5 + $0x6cc] ss:$24 sps:$4 sm:$0xff]   ;;  %v6207_v45 = vld [vmem:[#allocation5 + $0x6fc] ss:$24 sps:$4 sm:$0xff]  }
 0x13d   :  { %3951 = vmatprep.subr.bf16.mxu0 %v6127_v44  ;;  %v6199_v44 = vld [vmem:[#allocation5 + $0x6c8] ss:$24 sps:$4 sm:$0xff]  }
 0x13f   :  { %4034 = vmatpush1.bf16.msra.mxu1 %v6128_v50  ;;  %v6205_v50 = vld [vmem:[#allocation5 + $0x6f8] ss:$24 sps:$4 sm:$0xff]  }
 0x140   :  { %3952 = vmatpush1.bf16.msra.mxu0 %v6125_v49  ;;  %4035 = vmatprep.subr.bf16.mxu1 %v6136_v52  ;;  %v6210_v49 = vld [vmem:[#allocation5 + $0x104] ss:$24 sps:$4 sm:$0xff]  }
 0x141   :  { %3953 = vmatprep.subr.bf16.mxu0 %v6133_v51  ;;  %v6208_v51 = vld [vmem:[#allocation5 + $0x100] ss:$24 sps:$4 sm:$0xff]   ;;  %v6213_v52 = vld [vmem:[#allocation5 + $0x72c] ss:$24 sps:$4 sm:$0xff]  }
 0x143   :  { %4036 = vmatpush1.bf16.msra.mxu1 %v6134_v55  ;;  %v6211_v55 = vld [vmem:[#allocation5 + $0x728] ss:$24 sps:$4 sm:$0xff]  }
 0x144   :  { %3954 = vmatpush1.bf16.msra.mxu0 %v6131_v54  ;;  %4037 = vmatprep.subr.bf16.mxu1 %v6142_v57  ;;  %v6216_v54 = vld [vmem:[#allocation5 + $0x134] ss:$24 sps:$4 sm:$0xff]  }
 0x145   :  { %3955 = vmatprep.subr.bf16.mxu0 %v6139_v56  ;;  %v6214_v56 = vld [vmem:[#allocation5 + $0x130] ss:$24 sps:$4 sm:$0xff]   ;;  %v6219_v57 = vld [vmem:[#allocation5 + $0x75c] ss:$24 sps:$4 sm:$0xff]  }
 0x147   :  { %4038 = vmatpush1.bf16.msra.mxu1 %v6140_v59  ;;  %v6217_v59 = vld [vmem:[#allocation5 + $0x758] ss:$24 sps:$4 sm:$0xff]  }
 0x148   :  { %3956 = vmatpush1.bf16.msra.mxu0 %v6137_v58  ;;  %4039 = vmatprep.subr.bf16.mxu1 %v6148_v62  ;;  %v6222_v58 = vld [vmem:[#allocation5 + $0x164] ss:$24 sps:$4 sm:$0xff]  }
 0x149   :  { %3957 = vmatprep.subr.bf16.mxu0 %v6145_v61  ;;  %v6220_v61 = vld [vmem:[#allocation5 + $0x160] ss:$24 sps:$4 sm:$0xff]   ;;  %v6225_v62 = vld [vmem:[#allocation5 + $0x78c] ss:$24 sps:$4 sm:$0xff]  }
 0x14b   :  { %4040 = vmatpush1.bf16.msra.mxu1 %v6146_v3  ;;  %v6223_v3 = vld [vmem:[#allocation5 + $0x788] ss:$24 sps:$4 sm:$0xff]  }
 0x14c   :  { %3958 = vmatpush1.bf16.msra.mxu0 %v6143_v2  ;;  %4041 = vmatprep.subr.bf16.mxu1 %v6154_v8  ;;  %v6228_v2 = vld [vmem:[#allocation5 + $0x194] ss:$24 sps:$4 sm:$0xff]  }
 0x14d   :  { %3959 = vmatprep.subr.bf16.mxu0 %v6151_v4  ;;  %v6226_v4 = vld [vmem:[#allocation5 + $0x190] ss:$24 sps:$4 sm:$0xff]   ;;  %v6231_v8 = vld [vmem:[#allocation5 + $0x7bc] ss:$24 sps:$4 sm:$0xff]  }
 0x14f   :  { %4042 = vmatpush1.bf16.msra.mxu1 %v6152_v12  ;;  %v6229_v12 = vld [vmem:[#allocation5 + $0x7b8] ss:$24 sps:$4 sm:$0xff]  }
 0x150   :  { %3960 = vmatpush1.bf16.msra.mxu0 %v6149_v10  ;;  %4043 = vmatprep.subr.bf16.mxu1 %v6160_v14  ;;  %v6234_v10 = vld [vmem:[#allocation5 + $0x1c4] ss:$24 sps:$4 sm:$0xff]  }
 0x151   :  { %3961 = vmatprep.subr.bf16.mxu0 %v6157_v13  ;;  %v6232_v13 = vld [vmem:[#allocation5 + $0x1c0] ss:$24 sps:$4 sm:$0xff]   ;;  %v6237_v14 = vld [vmem:[#allocation5 + $0x7ec] ss:$24 sps:$4 sm:$0xff]  }
 0x153   :  { %4044 = vmatpush1.bf16.msra.mxu1 %v6158_v16  ;;  %v6235_v16 = vld [vmem:[#allocation5 + $0x7e8] ss:$24 sps:$4 sm:$0xff]  }
 0x154   :  { %3962 = vmatpush1.bf16.msra.mxu0 %v6155_v53  ;;  %4045 = vmatprep.subr.bf16.mxu1 %v6166_v17  ;;  %v6240_v53 = vld [vmem:[#allocation5 + $0x1f4] ss:$24 sps:$4 sm:$0xff]  }
 0x155   :  { %3963 = vmatprep.subr.bf16.mxu0 %v6163_v63  ;;  %v6238_v63 = vld [vmem:[#allocation5 + $0x1f0] ss:$24 sps:$4 sm:$0xff]   ;;  %v6243_v17 = vld [vmem:[#allocation5 + $0x81c] ss:$24 sps:$4 sm:$0xff]  }
 0x157   :  { %4046 = vmatpush1.bf16.msra.mxu1 %v6164_v19  ;;  %v6241_v19 = vld [vmem:[#allocation5 + $0x818] ss:$24 sps:$4 sm:$0xff]  }
 0x158   :  { %3964 = vmatpush1.bf16.msra.mxu0 %v6161_v18  ;;  %4047 = vmatprep.subr.bf16.mxu1 %v6172_v21  ;;  %v6246_v18 = vld [vmem:[#allocation5 + $0x224] ss:$24 sps:$4 sm:$0xff]  }
 0x159   :  { %3965 = vmatprep.subr.bf16.mxu0 %v6169_v20  ;;  %v6244_v20 = vld [vmem:[#allocation5 + $0x220] ss:$24 sps:$4 sm:$0xff]   ;;  %v6249_v21 = vld [vmem:[#allocation5 + $0x84c] ss:$24 sps:$4 sm:$0xff]  }
 0x15b   :  { %4048 = vmatpush1.bf16.msra.mxu1 %v6170_v23  ;;  %v6247_v23 = vld [vmem:[#allocation5 + $0x848] ss:$24 sps:$4 sm:$0xff]  }
 0x15c   :  { %3966 = vmatpush1.bf16.msra.mxu0 %v6167_v22  ;;  %4058 = vmatprep.subr.bf16.mxu1 %v6177_v27  ;;  %v6252_v22 = vld [vmem:[#allocation5 + $0x254] ss:$24 sps:$4 sm:$0xff]  }
 0x15d   :  { %4222 = vmatprep.subr.bf16.mxu0 %v6180_v28  ;;  %v6255_v27 = vld [vmem:[#allocation5 + $0x87c] ss:$24 sps:$4 sm:$0xff]  }
 0x15e   :  { %4050 = vmatmul.mubr.bf16.vlgmr.msra.gmra.mrb[4].mxu1 %v7006_v47  ;;  %v6258_v28 = vld [vmem:[#allocation5 + $0x284] ss:$24 sps:$4 sm:$0xff]  }
 0x15f   :  { %3968 = vmatmul.mubr.bf16.vlgmr.msra.gmra.mrb[0].mxu0 %v7044_v29  ;;  %4059 = vmatpush1.bf16.msra.mxu1 %v6175_v30  ;;  %v6253_v30 = vld [vmem:[#allocation5 + $0x878] ss:$24 sps:$4 sm:$0xff]  }
 0x160   :  { %4223 = vmatpush1.bf16.msra.mxu0 %v6178_v31  ;;  %4060 = vmatprep.subr.bf16.mxu1 %v6183_v32  ;;  %v6256_v31 = vld [vmem:[#allocation5 + $0x280] ss:$24 sps:$4 sm:$0xff]   ;;  %v6261_v32 = vld [vmem:[#allocation5 + $0x8ac] ss:$24 sps:$4 sm:$0xff]  }
 0x161   :  { %4224 = vmatprep.subr.bf16.mxu0 %v6186_v33  ;;  %4090 = vmatprep.mubr.bf16.mxu1 %v6970_v11  ;;  %v6264_v33 = vld [vmem:[#allocation5 + $0x2b4] ss:$24 sps:$4 sm:$0xff]  }
 0x162   :  { %4254 = vmatprep.mubr.bf16.mxu0 %v6968_v5  ;;  %v6202_v5 = vld [vmem:[#allocation5 + $0xd0] ss:$24 sps:$4 sm:$0xff]  }
 0x163   :  { %4061 = vmatpush1.bf16.msra.mxu1 %v6181_v0  ;;  %v6259_v0 = vld [vmem:[#allocation5 + $0x8a8] ss:$24 sps:$4 sm:$0xff]  }
 0x164   :  { %4225 = vmatpush1.bf16.msra.mxu0 %v6184_v1  ;;  %4062 = vmatprep.subr.bf16.mxu1 %v6189_v34  ;;  %v6262_v1 = vld [vmem:[#allocation5 + $0x2b0] ss:$24 sps:$4 sm:$0xff]   ;;  %v6267_v34 = vld [vmem:[#allocation5 + $0x8dc] ss:$24 sps:$4 sm:$0xff]  }
 0x165   :  { %4226 = vmatprep.subr.bf16.mxu0 %v6192_v35  ;;  %v6270_v35 = vld [vmem:[#allocation5 + $0x2e4] ss:$24 sps:$4 sm:$0xff]  }
 0x167   :  { %4063 = vmatpush1.bf16.msra.mxu1 %v6187_v36  ;;  %v6265_v36 = vld [vmem:[#allocation5 + $0x8d8] ss:$24 sps:$4 sm:$0xff]  }
 0x168   :  { %4227 = vmatpush1.bf16.msra.mxu0 %v6190_v37  ;;  %4064 = vmatprep.subr.bf16.mxu1 %v6195_v38  ;;  %v6268_v37 = vld [vmem:[#allocation5 + $0x2e0] ss:$24 sps:$4 sm:$0xff]   ;;  %v6273_v38 = vld [vmem:[#allocation5 + $0x90c] ss:$24 sps:$4 sm:$0xff]  }
 0x169   :  { %4228 = vmatprep.subr.bf16.mxu0 %v6198_v39  ;;  %v6276_v39 = vld [vmem:[#allocation5 + $0x314] ss:$24 sps:$4 sm:$0xff]  }
 0x16b   :  { %4065 = vmatpush1.bf16.msra.mxu1 %v6193_v40  ;;  %v6271_v40 = vld [vmem:[#allocation5 + $0x908] ss:$24 sps:$4 sm:$0xff]  }
 0x16c   :  { %4229 = vmatpush1.bf16.msra.mxu0 %v6196_v41  ;;  %4066 = vmatprep.subr.bf16.mxu1 %v6201_v42  ;;  %v6274_v41 = vld [vmem:[#allocation5 + $0x310] ss:$24 sps:$4 sm:$0xff]   ;;  %v6279_v42 = vld [vmem:[#allocation5 + $0x93c] ss:$24 sps:$4 sm:$0xff]  }
 0x16d   :  { %4230 = vmatprep.subr.bf16.mxu0 %v6204_v43  ;;  %v6282_v43 = vld [vmem:[#allocation5 + $0x344] ss:$24 sps:$4 sm:$0xff]  }
 0x16f   :  { %4067 = vmatpush1.bf16.msra.mxu1 %v6199_v44  ;;  %v6277_v44 = vld [vmem:[#allocation5 + $0x938] ss:$24 sps:$4 sm:$0xff]  }
 0x170   :  { %4231 = vmatpush1.bf16.msra.mxu0 %v6202_v5  ;;  %4068 = vmatprep.subr.bf16.mxu1 %v6207_v45  ;;  %v6280_v5 = vld [vmem:[#allocation5 + $0x340] ss:$24 sps:$4 sm:$0xff]   ;;  %v6285_v45 = vld [vmem:[#allocation5 + $0x96c] ss:$24 sps:$4 sm:$0xff]  }
 0x171   :  { %4232 = vmatprep.subr.bf16.mxu0 %v6210_v49  ;;  %v6288_v49 = vld [vmem:[#allocation5 + $0x374] ss:$24 sps:$4 sm:$0xff]  }
 0x173   :  { %4069 = vmatpush1.bf16.msra.mxu1 %v6205_v50  ;;  %v6283_v50 = vld [vmem:[#allocation5 + $0x968] ss:$24 sps:$4 sm:$0xff]  }
 0x174   :  { %4233 = vmatpush1.bf16.msra.mxu0 %v6208_v51  ;;  %4070 = vmatprep.subr.bf16.mxu1 %v6213_v52  ;;  %v6286_v51 = vld [vmem:[#allocation5 + $0x370] ss:$24 sps:$4 sm:$0xff]   ;;  %v6291_v52 = vld [vmem:[#allocation5 + $0x99c] ss:$24 sps:$4 sm:$0xff]  }
 0x175   :  { %4234 = vmatprep.subr.bf16.mxu0 %v6216_v54  ;;  %v6289_v54 = vld [vmem:[#allocation5 + $0x998] ss:$24 sps:$4 sm:$0xff]  }
 0x177   :  { %4071 = vmatpush1.bf16.msra.mxu1 %v6211_v55  ;;  %v6292_v55 = vld [vmem:[#allocation5 + $0x3a0] ss:$24 sps:$4 sm:$0xff]  }
 0x178   :  { %4235 = vmatpush1.bf16.msra.mxu0 %v6214_v56  ;;  %4072 = vmatprep.subr.bf16.mxu1 %v6219_v57  ;;  %v6297_v56 = vld [vmem:[#allocation5 + $0x9cc] ss:$24 sps:$4 sm:$0xff]  }
 0x179   :  { %4236 = vmatprep.subr.bf16.mxu0 %v6222_v58  ;;  %v6300_v57 = vld [vmem:[#allocation5 + $0x3d4] ss:$24 sps:$4 sm:$0xff]   ;;  %v6295_v58 = vld [vmem:[#allocation5 + $0x9c8] ss:$24 sps:$4 sm:$0xff]  }
 0x17b   :  { %4073 = vmatpush1.bf16.msra.mxu1 %v6217_v59  ;;  %v6303_v59 = vld [vmem:[#allocation5 + $0x9fc] ss:$24 sps:$4 sm:$0xff]  }
 0x17c   :  { %4237 = vmatpush1.bf16.msra.mxu0 %v6220_v61  ;;  %4074 = vmatprep.subr.bf16.mxu1 %v6225_v62  ;;  %v6306_v61 = vld [vmem:[#allocation5 + $0x404] ss:$24 sps:$4 sm:$0xff]   ;;  %v6301_v62 = vld [vmem:[#allocation5 + $0x9f8] ss:$24 sps:$4 sm:$0xff]  }
 0x17d   :  { %4238 = vmatprep.subr.bf16.mxu0 %v6228_v2  ;;  %v6304_v2 = vld [vmem:[#allocation5 + $0x400] ss:$24 sps:$4 sm:$0xff]  }
 0x17f   :  { %4075 = vmatpush1.bf16.msra.mxu1 %v6223_v3  ;;  %v6309_v3 = vld [vmem:[#allocation5 + $0xa2c] ss:$24 sps:$4 sm:$0xff]  }
 0x180   :  { %4239 = vmatpush1.bf16.msra.mxu0 %v6226_v4  ;;  %4076 = vmatprep.subr.bf16.mxu1 %v6231_v8  ;;  %v6312_v4 = vld [vmem:[#allocation5 + $0x434] ss:$24 sps:$4 sm:$0xff]   ;;  %v6307_v8 = vld [vmem:[#allocation5 + $0xa28] ss:$24 sps:$4 sm:$0xff]  }
 0x181   :  { %4240 = vmatprep.subr.bf16.mxu0 %v6234_v10  ;;  %v6310_v10 = vld [vmem:[#allocation5 + $0x430] ss:$24 sps:$4 sm:$0xff]  }
 0x183   :  { %4077 = vmatpush1.bf16.msra.mxu1 %v6229_v12 }
 0x184   :  { %4241 = vmatpush1.bf16.msra.mxu0 %v6232_v13  ;;  %4078 = vmatprep.subr.bf16.mxu1 %v6237_v14 }
 0x185   :  { %4242 = vmatprep.subr.bf16.mxu0 %v6240_v53  ;;  %v6315_v53 = vld [vmem:[#allocation5 + $0xa5c] ss:$24 sps:$4 sm:$0xff]  }
 0x187   :  { %4079 = vmatpush1.bf16.msra.mxu1 %v6235_v16  ;;  %v6318_v16 = vld [vmem:[#allocation5 + $0x464] ss:$24 sps:$4 sm:$0xff]  }
 0x188   :  { %4243 = vmatpush1.bf16.msra.mxu0 %v6238_v63  ;;  %4080 = vmatprep.subr.bf16.mxu1 %v6243_v17  ;;  %v6313_v17 = vld [vmem:[#allocation5 + $0xa58] ss:$24 sps:$4 sm:$0xff]  }
 0x189   :  { %4244 = vmatprep.subr.bf16.mxu0 %v6246_v18  ;;  %v6316_v18 = vld [vmem:[#allocation5 + $0x460] ss:$24 sps:$4 sm:$0xff]  }
 0x18b   :  { %4081 = vmatpush1.bf16.msra.mxu1 %v6241_v19  ;;  %v6321_v19 = vld [vmem:[#allocation5 + $0xa8c] ss:$24 sps:$4 sm:$0xff]  }
 0x18c   :  { %4245 = vmatpush1.bf16.msra.mxu0 %v6244_v20  ;;  %4082 = vmatprep.subr.bf16.mxu1 %v6249_v21  ;;  %v6324_v20 = vld [vmem:[#allocation5 + $0x494] ss:$24 sps:$4 sm:$0xff]   ;;  %v6319_v21 = vld [vmem:[#allocation5 + $0xa88] ss:$24 sps:$4 sm:$0xff]  }
 0x18d   :  { %4246 = vmatprep.subr.bf16.mxu0 %v6252_v22  ;;  %v6322_v22 = vld [vmem:[#allocation5 + $0x490] ss:$24 sps:$4 sm:$0xff]  }
 0x18f   :  { %4083 = vmatpush1.bf16.msra.mxu1 %v6247_v23  ;;  %v6327_v23 = vld [vmem:[#allocation5 + $0xabc] ss:$24 sps:$4 sm:$0xff]  }
 0x190   :  { %4247 = vmatpush1.bf16.msra.mxu0 %v6250_v26  ;;  %4084 = vmatprep.subr.bf16.mxu1 %v6255_v27  ;;  %v6330_v26 = vld [vmem:[#allocation5 + $0x4c4] ss:$24 sps:$4 sm:$0xff]   ;;  %v6325_v27 = vld [vmem:[#allocation5 + $0xab8] ss:$24 sps:$4 sm:$0xff]  }
 0x191   :  { %4248 = vmatprep.subr.bf16.mxu0 %v6258_v28  ;;  %v6328_v28 = vld [vmem:[#allocation5 + $0x4c0] ss:$24 sps:$4 sm:$0xff]  }
 0x193   :  { %4085 = vmatpush1.bf16.msra.mxu1 %v6253_v30  ;;  %v6333_v30 = vld [vmem:[#allocation5 + $0xaec] ss:$24 sps:$4 sm:$0xff]  }
 0x194   :  { %4249 = vmatpush1.bf16.msra.mxu0 %v6256_v31  ;;  %4086 = vmatprep.subr.bf16.mxu1 %v6261_v32  ;;  %v6336_v31 = vld [vmem:[#allocation5 + $0x4f4] ss:$24 sps:$4 sm:$0xff]   ;;  %v6331_v32 = vld [vmem:[#allocation5 + $0xae8] ss:$24 sps:$4 sm:$0xff]  }
 0x195   :  { %4250 = vmatprep.subr.bf16.mxu0 %v6264_v33  ;;  %v6334_v33 = vld [vmem:[#allocation5 + $0x4f0] ss:$24 sps:$4 sm:$0xff]  }
 0x197   :  { %4087 = vmatpush1.bf16.msra.mxu1 %v6259_v0  ;;  %v6339_v0 = vld [vmem:[#allocation5 + $0xb1c] ss:$24 sps:$4 sm:$0xff]  }
 0x198   :  { %4251 = vmatpush1.bf16.msra.mxu0 %v6262_v1  ;;  %4088 = vmatprep.subr.bf16.mxu1 %v6267_v34  ;;  %v6342_v1 = vld [vmem:[#allocation5 + $0x524] ss:$24 sps:$4 sm:$0xff]   ;;  %v6337_v34 = vld [vmem:[#allocation5 + $0xb18] ss:$24 sps:$4 sm:$0xff]  }
 0x199   :  { %4252 = vmatprep.subr.bf16.mxu0 %v6270_v35  ;;  %v6340_v35 = vld [vmem:[#allocation5 + $0x520] ss:$24 sps:$4 sm:$0xff]  }
 0x19b   :  { %4089 = vmatpush1.bf16.msra.mxu1 %v6265_v36  ;;  %v6345_v36 = vld [vmem:[#allocation5 + $0xb4c] ss:$24 sps:$4 sm:$0xff]  }
 0x19c   :  { %4253 = vmatpush1.bf16.msra.mxu0 %v6268_v37  ;;  %4099 = vmatprep.subr.bf16.mxu1 %v6273_v38  ;;  %v6348_v37 = vld [vmem:[#allocation5 + $0x554] ss:$24 sps:$4 sm:$0xff]   ;;  %v6343_v38 = vld [vmem:[#allocation5 + $0xb48] ss:$24 sps:$4 sm:$0xff]  }
 0x19d   :  { %4263 = vmatprep.subr.bf16.mxu0 %v6276_v39  ;;  %v6346_v39 = vld [vmem:[#allocation5 + $0x550] ss:$24 sps:$4 sm:$0xff]  }
 0x19e   :  { %4091 = vmatmul.mubr.bf16.vlgmr.msra.gmra.mrb[4].mxu1 %v6976_v25 }
 0x19f   :  { %4255 = vmatmul.mubr.bf16.vlgmr.msra.gmra.mrb[4].mxu0 %v6974_v24  ;;  %4100 = vmatpush1.bf16.msra.mxu1 %v6271_v40  ;;  %v6294_v24 = vld [vmem:[#allocation5 + $0x3a4] ss:$24 sps:$4 sm:$0xff]  }
 0x1a0   :  { %4264 = vmatpush1.bf16.msra.mxu0 %v6274_v41  ;;  %4101 = vmatprep.subr.bf16.mxu1 %v6279_v42  ;;  %v6351_v40 = vld [vmem:[#allocation5 + $0xb7c] ss:$24 sps:$4 sm:$0xff]   ;;  %v6349_v42 = vld [vmem:[#allocation5 + $0xb78] ss:$24 sps:$4 sm:$0xff]  }
 0x1a1   :  { %4265 = vmatprep.subr.bf16.mxu0 %v6282_v43  ;;  %4131 = vmatprep.mubr.bf16.mxu1 %v6998_v9  ;;  %v6354_v41 = vld [vmem:[#allocation5 + $0x584] ss:$24 sps:$4 sm:$0xff]   ;;  %v6352_v43 = vld [vmem:[#allocation5 + $0x580] ss:$24 sps:$4 sm:$0xff]  }
 0x1a2   :  { %4295 = vmatprep.mubr.bf16.mxu0 %v6996_v7  ;;  %v6298_v7 = vld [vmem:[#allocation5 + $0x3d0] ss:$24 sps:$4 sm:$0xff]  }
 0x1a3   :  { %4102 = vmatpush1.bf16.msra.mxu1 %v6277_v44  ;;  %v6357_v44 = vld [vmem:[#allocation5 + $0xbac] ss:$24 sps:$4 sm:$0xff]  }
 0x1a4   :  { %4266 = vmatpush1.bf16.msra.mxu0 %v6280_v5  ;;  %4103 = vmatprep.subr.bf16.mxu1 %v6285_v45  ;;  %v6360_v5 = vld [vmem:[#allocation5 + $0x5b4] ss:$24 sps:$4 sm:$0xff]   ;;  %v6355_v45 = vld [vmem:[#allocation5 + $0xba8] ss:$24 sps:$4 sm:$0xff]  }
 0x1a5   :  { %4267 = vmatprep.subr.bf16.mxu0 %v6288_v49  ;;  %v6358_v49 = vld [vmem:[#allocation5 + $0x5b0] ss:$24 sps:$4 sm:$0xff]  }
 0x1a7   :  { %4104 = vmatpush1.bf16.msra.mxu1 %v6283_v50  ;;  %v6363_v50 = vld [vmem:[#allocation5 + $0xbdc] ss:$24 sps:$4 sm:$0xff]  }
 0x1a8   :  { %4268 = vmatpush1.bf16.msra.mxu0 %v6286_v51  ;;  %4105 = vmatprep.subr.bf16.mxu1 %v6291_v52  ;;  %v6366_v51 = vld [vmem:[#allocation5 + $0x5e4] ss:$24 sps:$4 sm:$0xff]   ;;  %v6361_v52 = vld [vmem:[#allocation5 + $0xbd8] ss:$24 sps:$4 sm:$0xff]  }
 0x1a9   :  { %4269 = vmatprep.subr.bf16.mxu0 %v6294_v24  ;;  %v6364_v24 = vld [vmem:[#allocation5 + $0x5e0] ss:$24 sps:$4 sm:$0xff]  }
 0x1ab   :  { %4106 = vmatpush1.bf16.msra.mxu1 %v6289_v54  ;;  %v6369_v54 = vld [vmem:[#allocation5 + $0xc0c] ss:$24 sps:$4 sm:$0xff]  }
 0x1ac   :  { %4270 = vmatpush1.bf16.msra.mxu0 %v6292_v55  ;;  %4107 = vmatprep.subr.bf16.mxu1 %v6297_v56  ;;  %v6372_v55 = vld [vmem:[#allocation5 + $0x614] ss:$24 sps:$4 sm:$0xff]   ;;  %v6367_v56 = vld [vmem:[#allocation5 + $0xc08] ss:$24 sps:$4 sm:$0xff]  }
 0x1ad   :  { %4271 = vmatprep.subr.bf16.mxu0 %v6300_v57  ;;  %v6370_v57 = vld [vmem:[#allocation5 + $0x610] ss:$24 sps:$4 sm:$0xff]  }
 0x1af   :  { %4108 = vmatpush1.bf16.msra.mxu1 %v6295_v58  ;;  %v6375_v58 = vld [vmem:[#allocation5 + $0xc3c] ss:$24 sps:$4 sm:$0xff]  }
 0x1b0   :  { %4272 = vmatpush1.bf16.msra.mxu0 %v6298_v7  ;;  %4109 = vmatprep.subr.bf16.mxu1 %v6303_v59  ;;  %v6378_v7 = vld [vmem:[#allocation5 + $0x644] ss:$24 sps:$4 sm:$0xff]   ;;  %v6373_v59 = vld [vmem:[#allocation5 + $0xc38] ss:$24 sps:$4 sm:$0xff]  }
 0x1b1   :  { %4273 = vmatprep.subr.bf16.mxu0 %v6306_v61  ;;  %v7054_v12 = vpop.f32.mrb[0].mxu1  ;;  %v6376_v61 = vld [vmem:[#allocation5 + $0x640] ss:$24 sps:$4 sm:$0xff]  }
 0x1b2   :  { %v7056_v13 = vpop.f32.mrb[1].mxu1 }
 0x1b3   :  { %4110 = vmatpush1.bf16.msra.mxu1 %v6301_v62  ;;  %v3809_v14 = vpop.f32.mrb[2].mxu1  ;;  %v6381_v62 = vld [vmem:[#allocation5 + $0xc6c] ss:$24 sps:$4 sm:$0xff]  }
 0x1b4   :  { %4274 = vmatpush1.bf16.msra.mxu0 %v6304_v2  ;;  %4111 = vmatprep.subr.bf16.mxu1 %v6309_v3  ;;  %v3810_v63 = vpop.f32.mrb[3].mxu1  ;;  %v6384_v2 = vld [vmem:[#allocation5 + $0x674] ss:$24 sps:$4 sm:$0xff]   ;;  %v6379_v3 = vld [vmem:[#allocation5 + $0xc68] ss:$24 sps:$4 sm:$0xff]  }
 0x1b5   :  { %4275 = vmatprep.subr.bf16.mxu0 %v6312_v4  ;;  %v6382_v4 = vld [vmem:[#allocation5 + $0x670] ss:$24 sps:$4 sm:$0xff]  }
 0x1b6   :  { %v6385_v14 = vld [vmem:[#allocation5 + $0xc98] ss:$24 sps:$4 sm:$0xff]   ;;  %v6391_v63 = vld [vmem:[#allocation5 + $0xcc8] ss:$24 sps:$4 sm:$0xff]  }
 0x1b7   :  { %4112 = vmatpush1.bf16.msra.mxu1 %v6307_v8  ;;  %v6387_v8 = vld [vmem:[#allocation5 + $0xc9c] ss:$24 sps:$4 sm:$0xff]  }
 0x1b8   :  { %4276 = vmatpush1.bf16.msra.mxu0 %v6310_v10  ;;  %4113 = vmatprep.subr.bf16.mxu1 %v6315_v53  ;;  %v6390_v10 = vld [vmem:[#allocation5 + $0x6a4] ss:$24 sps:$4 sm:$0xff]  }
 0x1b9   :  { %4277 = vmatprep.subr.bf16.mxu0 %v6318_v16  ;;  %v6393_v53 = vld [vmem:[#allocation5 + $0xccc] ss:$24 sps:$4 sm:$0xff]  }
 0x1ba   :  { %v6396_v16 = vld [vmem:[#allocation5 + $0x6d4] ss:$24 sps:$4 sm:$0xff]  }
 0x1bb   :  { %4114 = vmatpush1.bf16.msra.mxu1 %v6313_v17  ;;  %v6399_v17 = vld [vmem:[#allocation5 + $0xcfc] ss:$24 sps:$4 sm:$0xff]  }
 0x1bc   :  { %4278 = vmatpush1.bf16.msra.mxu0 %v6316_v18  ;;  %4115 = vmatprep.subr.bf16.mxu1 %v6321_v19  ;;  %v6402_v18 = vld [vmem:[#allocation5 + $0x704] ss:$24 sps:$4 sm:$0xff]   ;;  %v6397_v19 = vld [vmem:[#allocation5 + $0xcf8] ss:$24 sps:$4 sm:$0xff]  }
 0x1bd   :  { %4279 = vmatprep.subr.bf16.mxu0 %v6324_v20  ;;  %v6400_v20 = vld [vmem:[#allocation5 + $0x700] ss:$24 sps:$4 sm:$0xff]  }
 0x1bf   :  { %4116 = vmatpush1.bf16.msra.mxu1 %v6319_v21  ;;  %v6405_v21 = vld [vmem:[#allocation5 + $0xd2c] ss:$24 sps:$4 sm:$0xff]  }
 0x1c0   :  { %4280 = vmatpush1.bf16.msra.mxu0 %v6322_v22  ;;  %4117 = vmatprep.subr.bf16.mxu1 %v6327_v23  ;;  %v6408_v22 = vld [vmem:[#allocation5 + $0x734] ss:$24 sps:$4 sm:$0xff]   ;;  %v6403_v23 = vld [vmem:[#allocation5 + $0xd28] ss:$24 sps:$4 sm:$0xff]  }
 0x1c1   :  { %4281 = vmatprep.subr.bf16.mxu0 %v6330_v26  ;;  %v6406_v26 = vld [vmem:[#allocation5 + $0x730] ss:$24 sps:$4 sm:$0xff]  }
 0x1c3   :  { %4118 = vmatpush1.bf16.msra.mxu1 %v6325_v27  ;;  %v6411_v27 = vld [vmem:[#allocation5 + $0xd5c] ss:$24 sps:$4 sm:$0xff]  }
 0x1c4   :  { %4282 = vmatpush1.bf16.msra.mxu0 %v6328_v28  ;;  %4119 = vmatprep.subr.bf16.mxu1 %v6333_v30  ;;  %v6414_v28 = vld [vmem:[#allocation5 + $0x764] ss:$24 sps:$4 sm:$0xff]   ;;  %v6409_v30 = vld [vmem:[#allocation5 + $0xd58] ss:$24 sps:$4 sm:$0xff]  }
 0x1c5   :  { %4283 = vmatprep.subr.bf16.mxu0 %v6336_v31  ;;  %v6412_v31 = vld [vmem:[#allocation5 + $0x760] ss:$24 sps:$4 sm:$0xff]  }
 0x1c7   :  { %4120 = vmatpush1.bf16.msra.mxu1 %v6331_v32  ;;  %v6417_v32 = vld [vmem:[#allocation5 + $0xd8c] ss:$24 sps:$4 sm:$0xff]  }
 0x1c8   :  { %4284 = vmatpush1.bf16.msra.mxu0 %v6334_v33  ;;  %4121 = vmatprep.subr.bf16.mxu1 %v6339_v0  ;;  %v6420_v33 = vld [vmem:[#allocation5 + $0x794] ss:$24 sps:$4 sm:$0xff]   ;;  %v6415_v0 = vld [vmem:[#allocation5 + $0xd88] ss:$24 sps:$4 sm:$0xff]  }
 0x1c9   :  { %4285 = vmatprep.subr.bf16.mxu0 %v6342_v1  ;;  %v6418_v1 = vld [vmem:[#allocation5 + $0x790] ss:$24 sps:$4 sm:$0xff]  }
 0x1cb   :  { %4122 = vmatpush1.bf16.msra.mxu1 %v6337_v34  ;;  %v6423_v34 = vld [vmem:[#allocation5 + $0xdbc] ss:$24 sps:$4 sm:$0xff]  }
 0x1cc   :  { %4286 = vmatpush1.bf16.msra.mxu0 %v6340_v35  ;;  %4123 = vmatprep.subr.bf16.mxu1 %v6345_v36  ;;  %v6426_v35 = vld [vmem:[#allocation5 + $0x7c4] ss:$24 sps:$4 sm:$0xff]   ;;  %v6421_v36 = vld [vmem:[#allocation5 + $0xdb8] ss:$24 sps:$4 sm:$0xff]  }
 0x1cd   :  { %4287 = vmatprep.subr.bf16.mxu0 %v6348_v37  ;;  %v6424_v37 = vld [vmem:[#allocation5 + $0x7c0] ss:$24 sps:$4 sm:$0xff]  }
 0x1cf   :  { %4124 = vmatpush1.bf16.msra.mxu1 %v6343_v38  ;;  %v6429_v38 = vld [vmem:[#allocation5 + $0xdec] ss:$24 sps:$4 sm:$0xff]  }
 0x1d0   :  { %4288 = vmatpush1.bf16.msra.mxu0 %v6346_v39  ;;  %4125 = vmatprep.subr.bf16.mxu1 %v6351_v40  ;;  %v6432_v39 = vld [vmem:[#allocation5 + $0x7f4] ss:$24 sps:$4 sm:$0xff]   ;;  %v6427_v40 = vld [vmem:[#allocation5 + $0xde8] ss:$24 sps:$4 sm:$0xff]  }
 0x1d1   :  { %4289 = vmatprep.subr.bf16.mxu0 %v6354_v41  ;;  %v6430_v41 = vld [vmem:[#allocation5 + $0x7f0] ss:$24 sps:$4 sm:$0xff]  }
 0x1d3   :  { %4126 = vmatpush1.bf16.msra.mxu1 %v6349_v42  ;;  %v6435_v42 = vld [vmem:[#allocation5 + $0xe1c] ss:$24 sps:$4 sm:$0xff]  }
 0x1d4   :  { %4290 = vmatpush1.bf16.msra.mxu0 %v6352_v43  ;;  %4127 = vmatprep.subr.bf16.mxu1 %v6357_v44  ;;  %v6438_v43 = vld [vmem:[#allocation5 + $0x824] ss:$24 sps:$4 sm:$0xff]   ;;  %v6433_v44 = vld [vmem:[#allocation5 + $0xe18] ss:$24 sps:$4 sm:$0xff]  }
 0x1d5   :  { %4291 = vmatprep.subr.bf16.mxu0 %v6360_v5  ;;  %v6436_v5 = vld [vmem:[#allocation5 + $0x820] ss:$24 sps:$4 sm:$0xff]  }
 0x1d7   :  { %4128 = vmatpush1.bf16.msra.mxu1 %v6355_v45  ;;  %v6441_v45 = vld [vmem:[#allocation5 + $0xe4c] ss:$24 sps:$4 sm:$0xff]  }
 0x1d8   :  { %4292 = vmatpush1.bf16.msra.mxu0 %v6358_v49  ;;  %4129 = vmatprep.subr.bf16.mxu1 %v6363_v50  ;;  %v6444_v49 = vld [vmem:[#allocation5 + $0x854] ss:$24 sps:$4 sm:$0xff]   ;;  %v6439_v50 = vld [vmem:[#allocation5 + $0xe48] ss:$24 sps:$4 sm:$0xff]  }
 0x1d9   :  { %4293 = vmatprep.subr.bf16.mxu0 %v6366_v51  ;;  %v6442_v51 = vld [vmem:[#allocation5 + $0x850] ss:$24 sps:$4 sm:$0xff]  }
 0x1db   :  { %4130 = vmatpush1.bf16.msra.mxu1 %v6361_v52  ;;  %v6447_v52 = vld [vmem:[#allocation5 + $0xe7c] ss:$24 sps:$4 sm:$0xff]  }
 0x1dc   :  { %4294 = vmatpush1.bf16.msra.mxu0 %v6364_v24  ;;  %4140 = vmatprep.subr.bf16.mxu1 %v6369_v54  ;;  %v6450_v24 = vld [vmem:[#allocation5 + $0x884] ss:$24 sps:$4 sm:$0xff]   ;;  %v6445_v54 = vld [vmem:[#allocation5 + $0xe78] ss:$24 sps:$4 sm:$0xff]  }
 0x1dd   :  { %4304 = vmatprep.subr.bf16.mxu0 %v6372_v55  ;;  %v6448_v55 = vld [vmem:[#allocation5 + $0x880] ss:$24 sps:$4 sm:$0xff]  }
 0x1de   :  { %4132 = vmatmul.mubr.bf16.vlgmr.msra.gmra.mrb[4].mxu1 %v7008_v48 }
 0x1df   :  { %4296 = vmatmul.mubr.bf16.vlgmr.msra.gmra.mrb[4].mxu0 %v7006_v47  ;;  %4141 = vmatpush1.bf16.msra.mxu1 %v6367_v56  ;;  %v6388_v47 = vld [vmem:[#allocation5 + $0x6a0] ss:$24 sps:$4 sm:$0xff]   ;;  %v6453_v56 = vld [vmem:[#allocation5 + $0xeac] ss:$24 sps:$4 sm:$0xff]  }
 0x1e0   :  { %4305 = vmatpush1.bf16.msra.mxu0 %v6370_v57  ;;  %4142 = vmatprep.subr.bf16.mxu1 %v6375_v58  ;;  %v6456_v57 = vld [vmem:[#allocation5 + $0x8b4] ss:$24 sps:$4 sm:$0xff]   ;;  %v6451_v58 = vld [vmem:[#allocation5 + $0xea8] ss:$24 sps:$4 sm:$0xff]  }
 0x1e1   :  { %4306 = vmatprep.subr.bf16.mxu0 %v6378_v7  ;;  %4172 = vmatprep.mubr.bf16.mxu1 %v7021_v6  ;;  %v6454_v7 = vld [vmem:[#allocation5 + $0x8b0] ss:$24 sps:$4 sm:$0xff]  }
 0x1e2   :  { %4336 = vmatprep.mubr.bf16.mxu0 %v6970_v11  ;;  %v6394_v11 = vld [vmem:[#allocation5 + $0x6d0] ss:$24 sps:$4 sm:$0xff]  }
 0x1e3   :  { %4143 = vmatpush1.bf16.msra.mxu1 %v6373_v59  ;;  %v6459_v59 = vld [vmem:[#allocation5 + $0xedc] ss:$24 sps:$4 sm:$0xff]  }
 0x1e4   :  { %4307 = vmatpush1.bf16.msra.mxu0 %v6376_v61  ;;  %4144 = vmatprep.subr.bf16.mxu1 %v6381_v62  ;;  %v6462_v61 = vld [vmem:[#allocation5 + $0x8e4] ss:$24 sps:$4 sm:$0xff]   ;;  %v6457_v62 = vld [vmem:[#allocation5 + $0xed8] ss:$24 sps:$4 sm:$0xff]  }
 0x1e5   :  { %4308 = vmatprep.subr.bf16.mxu0 %v6384_v2  ;;  %v6460_v2 = vld [vmem:[#allocation5 + $0x8e0] ss:$24 sps:$4 sm:$0xff]  }
 0x1e7   :  { %4145 = vmatpush1.bf16.msra.mxu1 %v6379_v3  ;;  %v6465_v3 = vld [vmem:[#allocation5 + $0xf0c] ss:$24 sps:$4 sm:$0xff]  }
 0x1e8   :  { %4309 = vmatpush1.bf16.msra.mxu0 %v6382_v4  ;;  %4146 = vmatprep.subr.bf16.mxu1 %v6387_v8  ;;  %v6468_v4 = vld [vmem:[#allocation5 + $0x914] ss:$24 sps:$4 sm:$0xff]   ;;  %v6463_v8 = vld [vmem:[#allocation5 + $0xf08] ss:$24 sps:$4 sm:$0xff]  }
 0x1e9   :  { %4310 = vmatprep.subr.bf16.mxu0 %v6390_v10  ;;  %v6466_v10 = vld [vmem:[#allocation5 + $0x910] ss:$24 sps:$4 sm:$0xff]  }
 0x1eb   :  { %4147 = vmatpush1.bf16.msra.mxu1 %v6385_v14  ;;  %v6471_v14 = vld [vmem:[#allocation5 + $0xf3c] ss:$24 sps:$4 sm:$0xff]  }
 0x1ec   :  { %4311 = vmatpush1.bf16.msra.mxu0 %v6388_v47  ;;  %4148 = vmatprep.subr.bf16.mxu1 %v6393_v53  ;;  %v6474_v47 = vld [vmem:[#allocation5 + $0x944] ss:$24 sps:$4 sm:$0xff]   ;;  %v6469_v53 = vld [vmem:[#allocation5 + $0xf38] ss:$24 sps:$4 sm:$0xff]  }
 0x1ed   :  { %4312 = vmatprep.subr.bf16.mxu0 %v6396_v16  ;;  %v6472_v16 = vld [vmem:[#allocation5 + $0x940] ss:$24 sps:$4 sm:$0xff]  }
 0x1ef   :  { %4149 = vmatpush1.bf16.msra.mxu1 %v6391_v63  ;;  %v6477_v63 = vld [vmem:[#allocation5 + $0xf6c] ss:$24 sps:$4 sm:$0xff]  }
 0x1f0   :  { %4313 = vmatpush1.bf16.msra.mxu0 %v6394_v11  ;;  %4150 = vmatprep.subr.bf16.mxu1 %v6399_v17  ;;  %v6480_v11 = vld [vmem:[#allocation5 + $0x974] ss:$24 sps:$4 sm:$0xff]   ;;  %v6475_v17 = vld [vmem:[#allocation5 + $0xf68] ss:$24 sps:$4 sm:$0xff]  }
 0x1f1   :  { %4314 = vmatprep.subr.bf16.mxu0 %v6402_v18  ;;  %v6478_v18 = vld [vmem:[#allocation5 + $0x970] ss:$24 sps:$4 sm:$0xff]  }
 0x1f3   :  { %4151 = vmatpush1.bf16.msra.mxu1 %v6397_v19  ;;  %v6483_v19 = vld [vmem:[#allocation5 + $0xf9c] ss:$24 sps:$4 sm:$0xff]  }
 0x1f4   :  { %4315 = vmatpush1.bf16.msra.mxu0 %v6400_v20  ;;  %4152 = vmatprep.subr.bf16.mxu1 %v6405_v21  ;;  %v6481_v20 = vld [vmem:[#allocation5 + $0xf98] ss:$24 sps:$4 sm:$0xff]  }
 0x1f5   :  { %4316 = vmatprep.subr.bf16.mxu0 %v6408_v22  ;;  %v6484_v21 = vld [vmem:[#allocation5 + $0x9a0] ss:$24 sps:$4 sm:$0xff]   ;;  %v822_v22 = vsub.s32 0, %v6959_v46 }
 0x1f7   :  { %4153 = vmatpush1.bf16.msra.mxu1 %v6403_v23  ;;  %v6489_v23 = vld [vmem:[#allocation5 + $0xfcc] ss:$24 sps:$4 sm:$0xff]  }
 0x1f8   :  { %4317 = vmatpush1.bf16.msra.mxu0 %v6406_v26  ;;  %4154 = vmatprep.subr.bf16.mxu1 %v6411_v27  ;;  %v6492_v26 = vld [vmem:[#allocation5 + $0x9d4] ss:$24 sps:$4 sm:$0xff]   ;;  %v7067_v27 = vld [vmem:[#allocation7] sm:$0x3f] }
 0x1f9   :  { %4318 = vmatprep.subr.bf16.mxu0 %v6414_v28  ;;  %v6487_v28 = vld [vmem:[#allocation5 + $0xfc8] ss:$24 sps:$4 sm:$0xff]  }
 0x1fb   :  { %4155 = vmatpush1.bf16.msra.mxu1 %v6409_v30  ;;  %v6490_v30 = vld [vmem:[#allocation5 + $0x9d0] ss:$24 sps:$4 sm:$0xff]  }
 0x1fc   :  { %4319 = vmatpush1.bf16.msra.mxu0 %v6412_v31  ;;  %4156 = vmatprep.subr.bf16.mxu1 %v6417_v32  ;;  %v823_v31 = vrot.slane %v7067_v27, %v822_v22  ;;  %v6495_v32 = vld [vmem:[#allocation5 + $0xffc] ss:$24 sps:$4 sm:$0xff]  }
 0x1fd   :  { %4320 = vmatprep.subr.bf16.mxu0 %v6420_v33  ;;  %v6498_v33 = vld [vmem:[#allocation5 + $0xa04] ss:$24 sps:$4 sm:$0xff]  }
 0x1fe   :  { %v6558_v22 = vld [vmem:[#allocation5 + $0xbe4] ss:$24 sps:$4 sm:$0xff]  }
 0x1ff   :  { %4157 = vmatpush1.bf16.msra.mxu1 %v6415_v0 }
 0x200   :  { %4321 = vmatpush1.bf16.msra.mxu0 %v6418_v1  ;;  %4158 = vmatprep.subr.bf16.mxu1 %v6423_v34  ;;  %v6493_v1 = vld [vmem:[#allocation5 + $0xff8] ss:$24 sps:$4 sm:$0xff]  }
 0x201   :  { %4322 = vmatprep.subr.bf16.mxu0 %v6426_v35  ;;  %v6496_v34 = vld [vmem:[#allocation5 + $0xa00] ss:$24 sps:$4 sm:$0xff]   ;;  %v5696_v35 = vadd.f32 %v7054_v12, %v823_v31  ;;  %v6507_v12 = vld [vmem:[#allocation5 + $0x105c] ss:$24 sps:$4 sm:$0xff]   ;;  %v6563_v31 = vld [vmem:[#allocation8] sm:$0xff]  }
 0x203   :  { %4159 = vmatpush1.bf16.msra.mxu1 %v6421_v36  ;;  %v6501_v36 = vld [vmem:[#allocation5 + $0x102c] ss:$24 sps:$4 sm:$0xff]  }
 0x204   :  { %4323 = vmatpush1.bf16.msra.mxu0 %v6424_v37  ;;  %4160 = vmatprep.subr.bf16.mxu1 %v6429_v38  ;;  %v6504_v37 = vld [vmem:[#allocation5 + $0xa34] ss:$24 sps:$4 sm:$0xff]  }
 0x205   :  { %4324 = vmatprep.subr.bf16.mxu0 %v6432_v39 }
 0x207   :  { %4161 = vmatpush1.bf16.msra.mxu1 %v6427_v40 }
 0x208   :  { %4325 = vmatpush1.bf16.msra.mxu0 %v6430_v41  ;;  %4162 = vmatprep.subr.bf16.mxu1 %v6435_v42 }
 0x209   :  { %4326 = vmatprep.subr.bf16.mxu0 %v6438_v43 }
 0x20b   :  { %4163 = vmatpush1.bf16.msra.mxu1 %v6433_v44  ;;  %v6499_v44 = vld [vmem:[#allocation5 + $0x1028] ss:$24 sps:$4 sm:$0xff]  }
 0x20c   :  { %4327 = vmatpush1.bf16.msra.mxu0 %v6436_v5  ;;  %4164 = vmatprep.subr.bf16.mxu1 %v6441_v45  ;;  %v6502_v5 = vld [vmem:[#allocation5 + $0xa30] ss:$24 sps:$4 sm:$0xff]  }
 0x20d   :  { %4328 = vmatprep.subr.bf16.mxu0 %v6444_v49  ;;  %v6510_v49 = vld [vmem:[#allocation5 + $0xa64] ss:$24 sps:$4 sm:$0xff]  }
 0x20f   :  { %4165 = vmatpush1.bf16.msra.mxu1 %v6439_v50  ;;  %v6505_v50 = vld [vmem:[#allocation5 + $0x1058] ss:$24 sps:$4 sm:$0xff]  }
 0x210   :  { %4329 = vmatpush1.bf16.msra.mxu0 %v6442_v51  ;;  %4166 = vmatprep.subr.bf16.mxu1 %v6447_v52  ;;  %v6513_v51 = vld [vmem:[#allocation5 + $0x108c] ss:$24 sps:$4 sm:$0xff]  }
 0x211   :  { %4330 = vmatprep.subr.bf16.mxu0 %v6450_v24  ;;  %v6516_v52 = vld [vmem:[#allocation5 + $0xa94] ss:$24 sps:$4 sm:$0xff]   ;;  %v6511_v24 = vld [vmem:[#allocation5 + $0x1088] ss:$24 sps:$4 sm:$0xff]  }
 0x213   :  { %4167 = vmatpush1.bf16.msra.mxu1 %v6445_v54  ;;  %v6514_v54 = vld [vmem:[#allocation5 + $0xa90] ss:$24 sps:$4 sm:$0xff]  }
 0x214   :  { %4331 = vmatpush1.bf16.msra.mxu0 %v6448_v55  ;;  %4168 = vmatprep.subr.bf16.mxu1 %v6453_v56  ;;  %v6519_v55 = vld [vmem:[#allocation5 + $0x10bc] ss:$24 sps:$4 sm:$0xff]  }
 0x215   :  { %4332 = vmatprep.subr.bf16.mxu0 %v6456_v57  ;;  %v6522_v56 = vld [vmem:[#allocation5 + $0xac4] ss:$24 sps:$4 sm:$0xff]   ;;  %v6517_v57 = vld [vmem:[#allocation5 + $0x10b8] ss:$24 sps:$4 sm:$0xff]  }
 0x217   :  { %4169 = vmatpush1.bf16.msra.mxu1 %v6451_v58  ;;  %v6520_v58 = vld [vmem:[#allocation5 + $0xac0] ss:$24 sps:$4 sm:$0xff]  }
 0x218   :  { %4333 = vmatpush1.bf16.msra.mxu0 %v6454_v7  ;;  %4170 = vmatprep.subr.bf16.mxu1 %v6459_v59  ;;  %v6525_v7 = vld [vmem:[#allocation5 + $0x10ec] ss:$24 sps:$4 sm:$0xff]  }
 0x219   :  { %4334 = vmatprep.subr.bf16.mxu0 %v6462_v61  ;;  %v6528_v59 = vld [vmem:[#allocation5 + $0xaf4] ss:$24 sps:$4 sm:$0xff]   ;;  %v6523_v61 = vld [vmem:[#allocation5 + $0x10e8] ss:$24 sps:$4 sm:$0xff]  }
 0x21b   :  { %4171 = vmatpush1.bf16.msra.mxu1 %v6457_v62  ;;  %v6526_v62 = vld [vmem:[#allocation5 + $0xaf0] ss:$24 sps:$4 sm:$0xff]  }
 0x21c   :  { %4335 = vmatpush1.bf16.msra.mxu0 %v6460_v2  ;;  %4181 = vmatprep.subr.bf16.mxu1 %v6465_v3  ;;  %v6531_v2 = vld [vmem:[#allocation5 + $0x111c] ss:$24 sps:$4 sm:$0xff]  }
 0x21d   :  { %4345 = vmatprep.subr.bf16.mxu0 %v6468_v4  ;;  %v6534_v3 = vld [vmem:[#allocation5 + $0xb24] ss:$24 sps:$4 sm:$0xff]   ;;  %v6529_v4 = vld [vmem:[#allocation5 + $0x1118] ss:$24 sps:$4 sm:$0xff]  }
 0x21e   :  { %4173 = vmatmul.mubr.bf16.vlgmr.msra.gmra.mrb[4].mxu1 %v7034_v15 }
 0x21f   :  { %4337 = vmatmul.mubr.bf16.vlgmr.msra.gmra.mrb[4].mxu0 %v6976_v25  ;;  %4182 = vmatpush1.bf16.msra.mxu1 %v6463_v8  ;;  %v6486_v25 = vld [vmem:[#allocation5 + $0x9a4] ss:$24 sps:$4 sm:$0xff]   ;;  %v6532_v8 = vld [vmem:[#allocation5 + $0xb20] ss:$24 sps:$4 sm:$0xff]  }
 0x220   :  { %4346 = vmatpush1.bf16.msra.mxu0 %v6466_v10  ;;  %4183 = vmatprep.subr.bf16.mxu1 %v6471_v14  ;;  %v6537_v10 = vld [vmem:[#allocation5 + $0x114c] ss:$24 sps:$4 sm:$0xff]  }
 0x221   :  { %4347 = vmatprep.subr.bf16.mxu0 %v6474_v47  ;;  %4213 = vmatprep.mubr.bf16.mxu1 %v7036_v60  ;;  %v6540_v14 = vld [vmem:[#allocation5 + $0xb54] ss:$24 sps:$4 sm:$0xff]   ;;  %v6535_v47 = vld [vmem:[#allocation5 + $0x1148] ss:$24 sps:$4 sm:$0xff]  }
 0x222   :  { %4377 = vmatprep.mubr.bf16.mxu0 %v6998_v9  ;;  %v826_v9 = vsub.s32 1, %v6959_v46 }
 0x223   :  { %4184 = vmatpush1.bf16.msra.mxu1 %v6469_v53  ;;  %v6538_v53 = vld [vmem:[#allocation5 + $0xb50] ss:$24 sps:$4 sm:$0xff]  }
 0x224   :  { %4348 = vmatpush1.bf16.msra.mxu0 %v6472_v16  ;;  %4185 = vmatprep.subr.bf16.mxu1 %v6477_v63  ;;  %v827_v0 = vrot.slane %v7067_v27, %v826_v9  ;;  %v6543_v16 = vld [vmem:[#allocation5 + $0x117c] ss:$24 sps:$4 sm:$0xff]  }
 0x225   :  { %4349 = vmatprep.subr.bf16.mxu0 %v6480_v11  ;;  %v6546_v63 = vld [vmem:[#allocation5 + $0xb84] ss:$24 sps:$4 sm:$0xff]   ;;  %v6541_v11 = vld [vmem:[#allocation5 + $0x1178] ss:$24 sps:$4 sm:$0xff]   ;;  %v6561_v9 = vld [vmem:[#allocation5 + $0xc14] ss:$24 sps:$4 sm:$0xff]  }
 0x226   :  { %v5698_v38 = vadd.f32 %v7056_v13, %v827_v0  ;;  %v6508_v13 = vld [vmem:[#allocation5 + $0xa60] ss:$24 sps:$4 sm:$0xff]  }
 0x227   :  { %4186 = vmatpush1.bf16.msra.mxu1 %v6475_v17  ;;  %v6544_v17 = vld [vmem:[#allocation5 + $0xb80] ss:$24 sps:$4 sm:$0xff]  }
 0x228   :  { %4350 = vmatpush1.bf16.msra.mxu0 %v6478_v18  ;;  %4187 = vmatprep.subr.bf16.mxu1 %v6483_v19  ;;  %v6549_v18 = vld [vmem:[#allocation5 + $0x11ac] ss:$24 sps:$4 sm:$0xff]  }
 0x229   :  { %4351 = vmatprep.subr.bf16.mxu0 %v6486_v25  ;;  %v6552_v19 = vld [vmem:[#allocation5 + $0xbb4] ss:$24 sps:$4 sm:$0xff]   ;;  %v6547_v25 = vld [vmem:[#allocation5 + $0x11a8] ss:$24 sps:$4 sm:$0xff]  }
 0x22b   :  { %4188 = vmatpush1.bf16.msra.mxu1 %v6481_v20  ;;  %v6550_v20 = vld [vmem:[#allocation5 + $0xbb0] ss:$24 sps:$4 sm:$0xff]  }
 0x22c   :  { %4352 = vmatpush1.bf16.msra.mxu0 %v6484_v21  ;;  %4189 = vmatprep.subr.bf16.mxu1 %v6489_v23  ;;  %v6555_v21 = vld [vmem:[#allocation5 + $0x11dc] ss:$24 sps:$4 sm:$0xff]   ;;  %v6553_v23 = vld [vmem:[#allocation5 + $0x11d8] ss:$24 sps:$4 sm:$0xff]  }
 0x22d   :  { %4353 = vmatprep.subr.bf16.mxu0 %v6492_v26  ;;  %v6556_v26 = vld [vmem:[#allocation5 + $0xbe0] ss:$24 sps:$4 sm:$0xff]  }
 0x22f   :  { %4190 = vmatpush1.bf16.msra.mxu1 %v6487_v28  ;;  %v6562_v28 = vld [vmem:[#allocation8 + $0x40] sm:$0xff]  }
 0x230   :  { %4354 = vmatpush1.bf16.msra.mxu0 %v6490_v30  ;;  %4191 = vmatprep.subr.bf16.mxu1 %v6495_v32  ;;  %v6559_v30 = vld [vmem:[#allocation5 + $0xc10] ss:$24 sps:$4 sm:$0xff]   ;;  %v6566_v32 = vld [vmem:[#allocation5 + $0xc44] ss:$24 sps:$4 sm:$0xff]  }
 0x231   :  { %4355 = vmatprep.subr.bf16.mxu0 %v6498_v33  ;;  %v6567_v33 = vld [vmem:[#allocation8 + $0x48] sm:$0xff]  }
 0x232   :  { %v3969_v39 = vpop.f32.mrb[0].mxu0 }
 0x233   :  { %v7074_v40 = vadd.f32 %v5696_v35, %v3969_v39  ;;  %v3971_v41 = vpop.f32.mrb[1].mxu0  ;;  %4192 = vmatpush1.bf16.msra.mxu1 %v6493_v1  ;;  %v6564_v1 = vld [vmem:[#allocation5 + $0xc40] ss:$24 sps:$4 sm:$0xff]   ;;  %v6571_v35 = vld [vmem:[#allocation5 + $0xc74] ss:$24 sps:$4 sm:$0xff]  }
 0x234   :  { %v7076_v42 = vadd.f32 %v5698_v38, %v3971_v41  ;;  %v3973_v43 = vpop.f32.mrb[2].mxu0  ;;  %4356 = vmatpush1.bf16.msra.mxu0 %v6496_v34  ;;  %4193 = vmatprep.subr.bf16.mxu1 %v6501_v36  ;;  %v6568_v34 = vld [vmem:[#allocation8 + $0x8] sm:$0xff]   ;;  %v6572_v36 = vld [vmem:[#allocation8 + $0x50] sm:$0xff]   ;;  %v6577_v41 = vld [vmem:[#allocation8 + $0x58] sm:$0xff]  }
 0x235   :  { %v3974_v45 = vpop.f32.mrb[3].mxu0  ;;  %4357 = vmatprep.subr.bf16.mxu0 %v6504_v37  ;;  %v6569_v37 = vld [vmem:[#allocation5 + $0xc70] ss:$24 sps:$4 sm:$0xff]   ;;  %v6573_v38 = vld [vmem:[#allocation8 + $0x10] sm:$0xff]  }
 0x236   :  { %v4469_v0 = vpack.c.bf16 %v7076_v42, %v7076_v42  ;;  %v6576_v39 = vld [vmem:[#allocation5 + $0xca4] ss:$24 sps:$4 sm:$0xff]   ;;  %v6581_v43 = vld [vmem:[#allocation5 + $0xcd4] ss:$24 sps:$4 sm:$0xff]  }
 0x237   :  { %4194 = vmatpush1.bf16.msra.mxu1 %v6499_v44  ;;  %v6578_v42 = vld [vmem:[#allocation8 + $0x18] sm:$0xff]   ;;  %v6582_v44 = vld [vmem:[#allocation8 + $0x60] sm:$0xff]  }
 0x238   :  { %4358 = vmatpush1.bf16.msra.mxu0 %v6502_v5  ;;  %4195 = vmatprep.subr.bf16.mxu1 %v6507_v12  ;;  %v6579_v5 = vld [vmem:[#allocation5 + $0xcd0] ss:$24 sps:$4 sm:$0xff]   ;;  %v6586_v45 = vld [vmem:[#allocation5 + $0xd04] ss:$24 sps:$4 sm:$0xff]  }
 0x239   :  { %4359 = vmatprep.subr.bf16.mxu0 %v6510_v49  ;;  %v6587_v12 = vld [vmem:[#allocation8 + $0x68] sm:$0xff]   ;;  %v6584_v49 = vld [vmem:[#allocation5 + $0xd00] ss:$24 sps:$4 sm:$0xff]  }
 0x23b   :  { %4196 = vmatpush1.bf16.msra.mxu1 %v6505_v50  ;;  %v6588_v50 = vld [vmem:[#allocation8 + $0x28] sm:$0xff]  }
 0x23c   :  { %4360 = vmatpush1.bf16.msra.mxu0 %v6508_v13  ;;  %4197 = vmatprep.subr.bf16.mxu1 %v6513_v51  ;;  %v6591_v13 = vld [vmem:[#allocation5 + $0xd34] ss:$24 sps:$4 sm:$0xff]  }
 0x23d   :  { %4361 = vmatprep.subr.bf16.mxu0 %v6516_v52  ;;  %v6592_v51 = vld [vmem:[#allocation8 + $0x70] sm:$0xff]   ;;  %v6589_v52 = vld [vmem:[#allocation5 + $0xd30] ss:$24 sps:$4 sm:$0xff]  }
 0x23f   :  { %4198 = vmatpush1.bf16.msra.mxu1 %v6511_v24  ;;  %v6593_v24 = vld [vmem:[#allocation8 + $0x30] sm:$0xff]  }
 0x240   :  { %4362 = vmatpush1.bf16.msra.mxu0 %v6514_v54  ;;  %4199 = vmatprep.subr.bf16.mxu1 %v6519_v55  ;;  %v6596_v54 = vld [vmem:[#allocation5 + $0xd64] ss:$24 sps:$4 sm:$0xff]  }
 0x241   :  { %4363 = vmatprep.subr.bf16.mxu0 %v6522_v56  ;;  %v6597_v55 = vld [vmem:[#allocation8 + $0x78] sm:$0xff]  }
 0x242   :  { %v6594_v56 = vld [vmem:[#allocation5 + $0xd60] ss:$24 sps:$4 sm:$0xff]  }
 0x243   :  { %4200 = vmatpush1.bf16.msra.mxu1 %v6517_v57  ;;  %v6598_v57 = vld [vmem:[#allocation8 + $0x38] sm:$0xff]  }
 0x244   :  { %4364 = vmatpush1.bf16.msra.mxu0 %v6520_v58  ;;  %4201 = vmatprep.subr.bf16.mxu1 %v6525_v7  ;;  %v6601_v58 = vld [vmem:[#allocation5 + $0xd94] ss:$24 sps:$4 sm:$0xff]  }
 0x245   :  { %4365 = vmatprep.subr.bf16.mxu0 %v6528_v59  ;;  %v6671_v7 = vld [vmem:[#allocation8 + $0xc0] sm:$0xff]  }
 0x246   :  { %v6599_v59 = vld [vmem:[#allocation5 + $0xd90] ss:$24 sps:$4 sm:$0xff]  }
 0x247   :  { %4202 = vmatpush1.bf16.msra.mxu1 %v6523_v61  ;;  %v6672_v61 = vld [vmem:[#allocation8 + $0x80] sm:$0xff]  }
 0x248   :  { %4366 = vmatpush1.bf16.msra.mxu0 %v6526_v62  ;;  %4203 = vmatprep.subr.bf16.mxu1 %v6531_v2  ;;  %v4468_v62 = vpack.c.bf16 %v7074_v40, %v7074_v40  ;;  %v6604_v2 = vld [vmem:[#allocation5 + $0xdc4] ss:$24 sps:$4 sm:$0xff]  }
 0x249   :  { %4367 = vmatprep.subr.bf16.mxu0 %v6534_v3  ;;  %v6673_v3 = vld [vmem:[#allocation8 + $0xc8] sm:$0xff]   ;;  %v6677_v40 = vld [vmem:[#allocation8 + $0xd8] sm:$0xff]  }
 0x24b   :  { %4204 = vmatpush1.bf16.msra.mxu1 %v6529_v4  ;;  %v6602_v4 = vld [vmem:[#allocation5 + $0xdc0] ss:$24 sps:$4 sm:$0xff]  }
 0x24c   :  { %4368 = vmatpush1.bf16.msra.mxu0 %v6532_v8  ;;  %4205 = vmatprep.subr.bf16.mxu1 %v6537_v10  ;;  %v6674_v8 = vld [vmem:[#allocation8 + $0x88] sm:$0xff]  }
 0x24d   :  { %4369 = vmatprep.subr.bf16.mxu0 %v6540_v14  ;;  %v6607_v10 = vld [vmem:[#allocation5 + $0xdf4] ss:$24 sps:$4 sm:$0xff]  }
 0x24e   :  { %v6675_v14 = vld [vmem:[#allocation8 + $0xd0] sm:$0xff]  }
 0x24f   :  { %4206 = vmatpush1.bf16.msra.mxu1 %v6535_v47  ;;  %v6605_v47 = vld [vmem:[#allocation5 + $0xdf0] ss:$24 sps:$4 sm:$0xff]  }
 0x250   :  { %4370 = vmatpush1.bf16.msra.mxu0 %v6538_v53  ;;  %4207 = vmatprep.subr.bf16.mxu1 %v6543_v16  ;;  %v6676_v53 = vld [vmem:[#allocation8 + $0x90] sm:$0xff]  }
 0x251   :  { %4371 = vmatprep.subr.bf16.mxu0 %v6546_v63  ;;  %v6610_v16 = vld [vmem:[#allocation5 + $0xe24] ss:$24 sps:$4 sm:$0xff]   ;;  %v6608_v63 = vld [vmem:[#allocation5 + $0xe20] ss:$24 sps:$4 sm:$0xff]  }
 0x253   :  { %4208 = vmatpush1.bf16.msra.mxu1 %v6541_v11  ;;  %v6678_v11 = vld [vmem:[#allocation8 + $0x98] sm:$0xff]  }
 0x254   :  { %4372 = vmatpush1.bf16.msra.mxu0 %v6544_v17  ;;  %4209 = vmatprep.subr.bf16.mxu1 %v6549_v18  ;;  %v6613_v17 = vld [vmem:[#allocation5 + $0xe54] ss:$24 sps:$4 sm:$0xff]  }
 0x255   :  { %4373 = vmatprep.subr.bf16.mxu0 %v6552_v19  ;;  %v6679_v18 = vld [vmem:[#allocation8 + $0xe0] sm:$0xff]  }
 0x256   :  { %v6611_v19 = vld [vmem:[#allocation5 + $0xe50] ss:$24 sps:$4 sm:$0xff]  }
 0x257   :  { %4210 = vmatpush1.bf16.msra.mxu1 %v6547_v25  ;;  %v6680_v25 = vld [vmem:[#allocation8 + $0xa0] sm:$0xff]  }
 0x258   :  { %4374 = vmatpush1.bf16.msra.mxu0 %v6550_v20  ;;  %4211 = vmatprep.subr.bf16.mxu1 %v6555_v21  ;;  %v6616_v20 = vld [vmem:[#allocation5 + $0xe84] ss:$24 sps:$4 sm:$0xff]   ;;  %v6681_v21 = vld [vmem:[#allocation8 + $0xe8] sm:$0xff]  }
 0x259   :  { %4375 = vmatprep.subr.bf16.mxu0 %v6558_v22  ;;  %v6614_v22 = vld [vmem:[#allocation5 + $0xe80] ss:$24 sps:$4 sm:$0xff]  }
 0x25b   :  { %4212 = vmatpush1.bf16.msra.mxu1 %v6553_v23  ;;  %v6682_v23 = vld [vmem:[#allocation8 + $0xa8] sm:$0xff]  }
 0x25c   :  { %4376 = vmatpush1.bf16.msra.mxu0 %v6556_v26  ;;  %5630 = vmatprep.subr.bf16.mxu1 %v6562_v28  ;;  %v6619_v26 = vld [vmem:[#allocation5 + $0xeb4] ss:$24 sps:$4 sm:$0xff]   ;;  %v6617_v28 = vld [vmem:[#allocation5 + $0xeb0] ss:$24 sps:$4 sm:$0xff]  }
 0x25d   :  { %4386 = vmatprep.subr.bf16.mxu0 %v6561_v9  ;;  %v6683_v9 = vld [vmem:[#allocation8 + $0xf0] sm:$0xff]  }
 0x25e   :  { %4214 = vmatmul.mubr.bf16.vlgmr.msra.gmra.mrb[4].mxu1 %v7044_v29 }
 0x25f   :  { %4378 = vmatmul.mubr.bf16.vlgmr.msra.gmra.mrb[4].mxu0 %v7008_v48  ;;  %5631 = vmatpush3.bf16.msra.mxu1 %v6563_v31  ;;  %v6574_v48 = vld [vmem:[#allocation5 + $0xca0] ss:$24 sps:$4 sm:$0xff]  }
 0x260   :  { %4387 = vmatpush1.bf16.msra.mxu0 %v6559_v30  ;;  %4897 = vmatprep.mubr.bf16.mxu1 %v4469_v0  ;;  %v6622_v30 = vld [vmem:[#allocation5 + $0xee4] ss:$24 sps:$4 sm:$0xff]   ;;  %v6620_v31 = vld [vmem:[#allocation5 + $0xee0] ss:$24 sps:$4 sm:$0xff]  }
 0x261   :  { %4388 = vmatprep.subr.bf16.mxu0 %v6566_v32  ;;  %5632 = vmatprep.subr.bf16.mxu1 %v6567_v33  ;;  %v6625_v32 = vld [vmem:[#allocation5 + $0xf14] ss:$24 sps:$4 sm:$0xff]   ;;  %v6623_v33 = vld [vmem:[#allocation5 + $0xf10] ss:$24 sps:$4 sm:$0xff]   ;;  %v6628_v0 = vld [vmem:[#allocation5 + $0xf44] ss:$24 sps:$4 sm:$0xff]  }
 0x262   :  { %4418 = vmatprep.mubr.bf16.mxu0 %v7021_v6  ;;  %v6583_v6 = vld [vmem:[#allocation8 + $0x20] sm:$0xff]  }
 0x263   :  { %5633 = vmatpush3.bf16.msra.mxu1 %v6568_v34  ;;  %v6631_v34 = vld [vmem:[#allocation5 + $0xf74] ss:$24 sps:$4 sm:$0xff]  }
 0x264   :  { %4389 = vmatpush1.bf16.msra.mxu0 %v6564_v1  ;;  %5634 = vmatprep.subr.bf16.mxu1 %v6572_v36  ;;  %v6626_v1 = vld [vmem:[#allocation5 + $0xf40] ss:$24 sps:$4 sm:$0xff]   ;;  %v6634_v36 = vld [vmem:[#allocation5 + $0xfa4] ss:$24 sps:$4 sm:$0xff]  }
 0x265   :  { %4390 = vmatprep.subr.bf16.mxu0 %v6571_v35  ;;  %v6629_v35 = vld [vmem:[#allocation5 + $0xf70] ss:$24 sps:$4 sm:$0xff]  }
 0x267   :  { %5635 = vmatpush3.bf16.msra.mxu1 %v6573_v38  ;;  %v6637_v38 = vld [vmem:[#allocation5 + $0xfd4] ss:$24 sps:$4 sm:$0xff]  }
 0x268   :  { %4391 = vmatpush1.bf16.msra.mxu0 %v6569_v37  ;;  %5636 = vmatprep.subr.bf16.mxu1 %v6577_v41  ;;  %v6632_v37 = vld [vmem:[#allocation5 + $0xfa0] ss:$24 sps:$4 sm:$0xff]   ;;  %v6640_v41 = vld [vmem:[#allocation5 + $0x1004] ss:$24 sps:$4 sm:$0xff]  }
 0x269   :  { %4392 = vmatprep.subr.bf16.mxu0 %v6576_v39  ;;  %v6635_v39 = vld [vmem:[#allocation5 + $0xfd0] ss:$24 sps:$4 sm:$0xff]  }
 0x26b   :  { %5637 = vmatpush3.bf16.msra.mxu1 %v6578_v42  ;;  %v6684_v42 = vld [vmem:[#allocation8 + $0xb0] sm:$0xff]  }
 0x26c   :  { %4393 = vmatpush1.bf16.msra.mxu0 %v6574_v48  ;;  %5638 = vmatprep.subr.bf16.mxu1 %v6582_v44  ;;  %v6643_v48 = vld [vmem:[#allocation5 + $0x1034] ss:$24 sps:$4 sm:$0xff]   ;;  %v6646_v44 = vld [vmem:[#allocation5 + $0x1064] ss:$24 sps:$4 sm:$0xff]  }
 0x26d   :  { %4394 = vmatprep.subr.bf16.mxu0 %v6581_v43  ;;  %v6685_v43 = vld [vmem:[#allocation8 + $0xf8] sm:$0xff]  }
 0x26f   :  { %5639 = vmatpush3.bf16.msra.mxu1 %v6583_v6  ;;  %v6644_v6 = vld [vmem:[#allocation5 + $0x1060] ss:$24 sps:$4 sm:$0xff]  }
 0x270   :  { %4395 = vmatpush1.bf16.msra.mxu0 %v6579_v5  ;;  %5640 = vmatprep.subr.bf16.mxu1 %v6587_v12  ;;  %v6686_v5 = vld [vmem:[#allocation8 + $0xb8] sm:$0xff]   ;;  %v6647_v12 = vld [vmem:[#allocation5 + $0x1090] ss:$24 sps:$4 sm:$0xff]  }
 0x271   :  { %4396 = vmatprep.subr.bf16.mxu0 %v6586_v45  ;;  %v6649_v45 = vld [vmem:[#allocation5 + $0x1094] ss:$24 sps:$4 sm:$0xff]  }
 0x273   :  { %5641 = vmatpush3.bf16.msra.mxu1 %v6588_v50  ;;  %v6650_v50 = vld [vmem:[#allocation5 + $0x10c0] ss:$24 sps:$4 sm:$0xff]  }
 0x274   :  { %4397 = vmatpush1.bf16.msra.mxu0 %v6584_v49  ;;  %5642 = vmatprep.subr.bf16.mxu1 %v6592_v51  ;;  %v6652_v49 = vld [vmem:[#allocation5 + $0x10c4] ss:$24 sps:$4 sm:$0xff]   ;;  %v6653_v51 = vld [vmem:[#allocation5 + $0x10f0] ss:$24 sps:$4 sm:$0xff]  }
 0x275   :  { %4398 = vmatprep.subr.bf16.mxu0 %v6591_v13  ;;  %v6655_v13 = vld [vmem:[#allocation5 + $0x10f4] ss:$24 sps:$4 sm:$0xff]  }
 0x277   :  { %5643 = vmatpush3.bf16.msra.mxu1 %v6593_v24  ;;  %v6656_v24 = vld [vmem:[#allocation5 + $0x1120] ss:$24 sps:$4 sm:$0xff]  }
 0x278   :  { %4399 = vmatpush1.bf16.msra.mxu0 %v6589_v52  ;;  %5644 = vmatprep.subr.bf16.mxu1 %v6597_v55  ;;  %v6658_v52 = vld [vmem:[#allocation5 + $0x1124] ss:$24 sps:$4 sm:$0xff]   ;;  %v6659_v55 = vld [vmem:[#allocation5 + $0x1150] ss:$24 sps:$4 sm:$0xff]  }
 0x279   :  { %4400 = vmatprep.subr.bf16.mxu0 %v6596_v54  ;;  %v6661_v54 = vld [vmem:[#allocation5 + $0x1154] ss:$24 sps:$4 sm:$0xff]  }
 0x27b   :  { %5645 = vmatpush3.bf16.msra.mxu1 %v6598_v57  ;;  %v6662_v57 = vld [vmem:[#allocation5 + $0x1180] ss:$24 sps:$4 sm:$0xff]  }
 0x27c   :  { %4401 = vmatpush1.bf16.msra.mxu0 %v6594_v56  ;;  %5652 = vmatprep.subr.bf16.mxu1 %v6671_v7  ;;  %v6664_v56 = vld [vmem:[#allocation5 + $0x1184] ss:$24 sps:$4 sm:$0xff]   ;;  %v6665_v7 = vld [vmem:[#allocation5 + $0x11b0] ss:$24 sps:$4 sm:$0xff]  }
 0x27d   :  { %4402 = vmatprep.subr.bf16.mxu0 %v6601_v58  ;;  %v6667_v58 = vld [vmem:[#allocation5 + $0x11b4] ss:$24 sps:$4 sm:$0xff]  }
 0x27e   :  { %4898 = vmatmul.mubr.bf16.vlgmr.msra.gmra.mrb[8].mxu1 %v4468_v62  ;;  %v6668_v62 = vld [vmem:[#allocation5 + $0x11e0] ss:$24 sps:$4 sm:$0xff]  }
 0x27f   :  { %5653 = vmatpush3.bf16.msra.mxu1 %v6672_v61  ;;  %v6687_v61 = vld [vmem:[#allocation8 + $0x140] sm:$0xff]  }
 0x280   :  { %4403 = vmatpush1.bf16.msra.mxu0 %v6599_v59  ;;  %5654 = vmatprep.subr.bf16.mxu1 %v6673_v3  ;;  %v6670_v59 = vld [vmem:[#allocation5 + $0x11e4] ss:$24 sps:$4 sm:$0xff]   ;;  %v834_v3 = vsub.s32 3, %v6959_v46 }
 0x281   :  { %4404 = vmatprep.subr.bf16.mxu0 %v6604_v2  ;;  %v830_v2 = vsub.s32 2, %v6959_v46 }
 0x283   :  { %5655 = vmatpush3.bf16.msra.mxu1 %v6674_v8  ;;  %v835_v8 = vrot.slane %v7067_v27, %v834_v3 }
 0x284   :  { %4405 = vmatpush1.bf16.msra.mxu0 %v6602_v4  ;;  %5656 = vmatprep.subr.bf16.mxu1 %v6675_v14  ;;  %v831_v4 = vrot.slane %v7067_v27, %v830_v2 }
 0x285   :  { %4406 = vmatprep.subr.bf16.mxu0 %v6607_v10 }
 0x287   :  { %5657 = vmatpush3.bf16.msra.mxu1 %v6676_v53 }
 0x288   :  { %4407 = vmatpush1.bf16.msra.mxu0 %v6605_v47  ;;  %5658 = vmatprep.subr.bf16.mxu1 %v6677_v40 }
 0x289   :  { %4408 = vmatprep.subr.bf16.mxu0 %v6610_v16 }
 0x28b   :  { %5659 = vmatpush3.bf16.msra.mxu1 %v6678_v11  ;;  %v6688_v11 = vld [vmem:[#allocation8 + $0x100] sm:$0xff]  }
 0x28c   :  { %4409 = vmatpush1.bf16.msra.mxu0 %v6608_v63  ;;  %5660 = vmatprep.subr.bf16.mxu1 %v6679_v18  ;;  %v6689_v18 = vld [vmem:[#allocation8 + $0x148] sm:$0xff]  }
 0x28d   :  { %4410 = vmatprep.subr.bf16.mxu0 %v6613_v17 }
 0x28f   :  { %5661 = vmatpush3.bf16.msra.mxu1 %v6680_v25  ;;  %v6692_v25 = vld [vmem:[#allocation8 + $0x110] sm:$0xff]  }
 0x290   :  { %4411 = vmatpush1.bf16.msra.mxu0 %v6611_v19  ;;  %5662 = vmatprep.subr.bf16.mxu1 %v6681_v21  ;;  %v6691_v19 = vld [vmem:[#allocation8 + $0x150] sm:$0xff]   ;;  %v6694_v21 = vld [vmem:[#allocation8 + $0x118] sm:$0xff]  }
 0x291   :  { %4412 = vmatprep.subr.bf16.mxu0 %v6616_v20  ;;  %v6693_v20 = vld [vmem:[#allocation8 + $0x158] sm:$0xff]  }
 0x293   :  { %5663 = vmatpush3.bf16.msra.mxu1 %v6682_v23  ;;  %v6696_v23 = vld [vmem:[#allocation8 + $0x120] sm:$0xff]  }
 0x294   :  { %4413 = vmatpush1.bf16.msra.mxu0 %v6614_v22  ;;  %5664 = vmatprep.subr.bf16.mxu1 %v6683_v9  ;;  %v6695_v22 = vld [vmem:[#allocation8 + $0x160] sm:$0xff]   ;;  %v6698_v9 = vld [vmem:[#allocation8 + $0x128] sm:$0xff]  }
 0x295   :  { %4414 = vmatprep.subr.bf16.mxu0 %v6619_v26  ;;  %v6697_v26 = vld [vmem:[#allocation8 + $0x168] sm:$0xff]  }
 0x297   :  { %5665 = vmatpush3.bf16.msra.mxu1 %v6684_v42 }
 0x298   :  { %4415 = vmatpush1.bf16.msra.mxu0 %v6617_v28  ;;  %5666 = vmatprep.subr.bf16.mxu1 %v6685_v43  ;;  %v6699_v28 = vld [vmem:[#allocation8 + $0x170] sm:$0xff]  }
 0x299   :  { %4416 = vmatprep.subr.bf16.mxu0 %v6622_v30  ;;  %v6700_v30 = vld [vmem:[#allocation8 + $0x130] sm:$0xff]  }
 0x29b   :  { %5667 = vmatpush3.bf16.msra.mxu1 %v6686_v5 }
 0x29c   :  { %4417 = vmatpush1.bf16.msra.mxu0 %v6620_v31  ;;  %5674 = vmatprep.subr.bf16.mxu1 %v6687_v61  ;;  %v6701_v31 = vld [vmem:[#allocation8 + $0x178] sm:$0xff]  }
 0x29d   :  { %4427 = vmatprep.subr.bf16.mxu0 %v6625_v32 }
 0x29f   :  { %4419 = vmatmul.mubr.bf16.vlgmr.msra.gmra.mrb[4].mxu0 %v7034_v15  ;;  %v6638_v15 = vld [vmem:[#allocation5 + $0x1000] ss:$24 sps:$4 sm:$0xff]  }
 0x2a0   :  { %4428 = vmatpush1.bf16.msra.mxu0 %v6623_v33  ;;  %4459 = vmatprep.mubr.bf16.mxu0 %v7036_v60  ;;  %v6641_v60 = vld [vmem:[#allocation5 + $0x1030] ss:$24 sps:$4 sm:$0xff]   ;;  %v6702_v33 = vld [vmem:[#allocation8 + $0x138] sm:$0xff]  }
 0x2a1   :  { %4429 = vmatprep.subr.bf16.mxu0 %v6628_v0 }
 0x2a4   :  { %4430 = vmatpush1.bf16.msra.mxu0 %v6626_v1 }
 0x2a5   :  { %4431 = vmatprep.subr.bf16.mxu0 %v6631_v34 }
 0x2a8   :  { %4432 = vmatpush1.bf16.msra.mxu0 %v6629_v35 }
 0x2a9   :  { %4433 = vmatprep.subr.bf16.mxu0 %v6634_v36  ;;  %v838_v36 = vsub.s32 4, %v6959_v46 }
 0x2ac   :  { %4434 = vmatpush1.bf16.msra.mxu0 %v6632_v37  ;;  %v842_v37 = vsub.s32 5, %v6959_v46 }
 0x2ad   :  { %4435 = vmatprep.subr.bf16.mxu0 %v6637_v38  ;;  %v839_v38 = vrot.slane %v7067_v27, %v838_v36 }
 0x2b0   :  { %4436 = vmatpush1.bf16.msra.mxu0 %v6635_v39  ;;  %v843_v39 = vrot.slane %v7067_v27, %v842_v37 }
 0x2b1   :  { %4437 = vmatprep.subr.bf16.mxu0 %v6640_v41 }
 0x2b4   :  { %4438 = vmatpush1.bf16.msra.mxu0 %v6638_v15 }
 0x2b5   :  { %4439 = vmatprep.subr.bf16.mxu0 %v6643_v48 }
 0x2b8   :  { %4440 = vmatpush1.bf16.msra.mxu0 %v6641_v60 }
 0x2b9   :  { %4441 = vmatprep.subr.bf16.mxu0 %v6646_v44 }
 0x2bc   :  { %4442 = vmatpush1.bf16.msra.mxu0 %v6644_v6  ;;  %v5581_v6 = vld [vmem:[#allocation10] ss:$0 sm:$0xff] }
 0x2bd   :  { %4443 = vmatprep.subr.bf16.mxu0 %v6649_v45 }
 0x2c0   :  { %4444 = vmatpush1.bf16.msra.mxu0 %v6647_v12 }
 0x2c1   :  { %4445 = vmatprep.subr.bf16.mxu0 %v6652_v49 }
 0x2c4   :  { %4446 = vmatpush1.bf16.msra.mxu0 %v6650_v50 }
 0x2c5   :  { %4447 = vmatprep.subr.bf16.mxu0 %v6655_v13 }
 0x2c8   :  { %4448 = vmatpush1.bf16.msra.mxu0 %v6653_v51 }
 0x2c9   :  { %4449 = vmatprep.subr.bf16.mxu0 %v6658_v52 }
 0x2cc   :  { %4450 = vmatpush1.bf16.msra.mxu0 %v6656_v24 }
 0x2cd   :  { %4451 = vmatprep.subr.bf16.mxu0 %v6661_v54 }
 0x2d0   :  { %4452 = vmatpush1.bf16.msra.mxu0 %v6659_v55 }
 0x2d1   :  { %4453 = vmatprep.subr.bf16.mxu0 %v6664_v56 }
 0x2d4   :  { %4454 = vmatpush1.bf16.msra.mxu0 %v6662_v57 }
 0x2d5   :  { %4455 = vmatprep.subr.bf16.mxu0 %v6667_v58 }
 0x2d8   :  { %4456 = vmatpush1.bf16.msra.mxu0 %v6665_v7 }
 0x2d9   :  { %4457 = vmatprep.subr.bf16.mxu0 %v6670_v59 }
 0x2dc   :  { %4458 = vmatpush1.bf16.msra.mxu0 %v6668_v62 }
 0x2df   :  { %4460 = vmatmul.mubr.bf16.vlgmr.msra.gmra.mrb[4].mxu0 %v7044_v29  ;;  %v6690_v29 = vld [vmem:[#allocation8 + $0x108] sm:$0xff]  }
 0x331   :  { %v4215_v10 = vpop.f32.mrb[4].mxu1 }
 0x332   :  { %v5700_v14 = vadd.f32 %v4215_v10, %v831_v4  ;;  %v4217_v47 = vpop.f32.mrb[5].mxu1 }
 0x333   :  { %v5701_v53 = vadd.f32 %v4217_v47, %v835_v8  ;;  %v4219_v16 = vpop.f32.mrb[6].mxu1 }
 0x334   :  { %v4220_v40 = vpop.f32.mrb[7].mxu1  ;;  %v4470_v17 = vpack.c.bf16 %v5700_v14, %v5700_v14 }
 0x335   :  { %v4471_v63 = vpack.c.bf16 %v5701_v53, %v5701_v53 }
 0x337   :  { %4937 = vmatprep.mubr.bf16.mxu1 %v4471_v63 }
 0x338   :  { %4938 = vmatmul.mubr.bf16.vlgmr.msra.gmra.mrb[12].mxu1 %v4470_v17 }
 0x339   :  { %5675 = vmatpush3.bf16.msra.mxu1 %v6688_v11 }
 0x33a   :  { %5676 = vmatprep.subr.bf16.mxu1 %v6689_v18 }
 0x33d   :  { %5677 = vmatpush3.bf16.msra.mxu1 %v6690_v29 }
 0x33e   :  { %5678 = vmatprep.subr.bf16.mxu1 %v6691_v19 }
 0x341   :  { %5679 = vmatpush3.bf16.msra.mxu1 %v6692_v25 }
 0x342   :  { %5680 = vmatprep.subr.bf16.mxu1 %v6693_v20 }
 0x345   :  { %5681 = vmatpush3.bf16.msra.mxu1 %v6694_v21 }
 0x346   :  { %5682 = vmatprep.subr.bf16.mxu1 %v6695_v22 }
 0x349   :  { %5683 = vmatpush3.bf16.msra.mxu1 %v6696_v23 }
 0x34a   :  { %5684 = vmatprep.subr.bf16.mxu1 %v6697_v26 }
 0x34d   :  { %5685 = vmatpush3.bf16.msra.mxu1 %v6698_v9 }
 0x34e   :  { %5686 = vmatprep.subr.bf16.mxu1 %v6699_v28 }
 0x351   :  { %v5646_v32 = vpop.f32.mrb[8].mxu1  ;;  %5687 = vmatpush3.bf16.msra.mxu1 %v6700_v30 }
 0x352   :  { %v5647_v0 = vpop.f32.mrb[9].mxu1  ;;  %5688 = vmatprep.subr.bf16.mxu1 %v6701_v31 }
 0x353   :  { %v5648_v1 = vadd.f32 %v5647_v0, %v5646_v32  ;;  %v5649_v34 = vpop.f32.mrb[10].mxu1 }
 0x354   :  { %v5650_v35 = vpop.f32.mrb[11].mxu1 }
 0x355   :  { %5689 = vmatpush3.bf16.msra.mxu1 %v6702_v33  ;;  %v4900_v49 = vadd.f32 %v5648_v1, %v5581_v6 }
 0x3b2   :  { %v4461_v41 = vpop.f32.mrb[4].mxu0 }
 0x3b3   :  { %v5702_v15 = vadd.f32 %v4461_v41, %v839_v38  ;;  %v4463_v48 = vpop.f32.mrb[5].mxu0 }
 0x3b4   :  { %v5703_v42 = vadd.f32 %v4463_v48, %v843_v39  ;;  %v4465_v60 = vpop.f32.mrb[6].mxu0 }
 0x3b5   :  { %v4466_v43 = vpop.f32.mrb[7].mxu0  ;;  %v4472_v5 = vpack.c.bf16 %v5702_v15, %v5702_v15 }
 0x3b6   :  { %v4473_v44 = vpack.c.bf16 %v5703_v42, %v5703_v42 }
 0x3b8   :  { %4977 = vmatprep.mubr.bf16.mxu1 %v4473_v44 }
 0x3b9   :  { %4978 = vmatmul.mubr.bf16.vlgmr.msra.gmra.mrb[16].mxu1 %v4472_v5 }
 0x40b   :  { %v5668_v45 = vpop.f32.mrb[12].mxu1 }
 0x40c   :  { %v5669_v12 = vpop.f32.mrb[13].mxu1 }
 0x40d   :  { %v5670_v50 = vadd.f32 %v5669_v12, %v5668_v45  ;;  %v5671_v46 = vpop.f32.mrb[14].mxu1 }
 0x40e   :  { %v5672_v13 = vpop.f32.mrb[15].mxu1 }
 0x40f   :  { %v4940_v51 = vadd.f32 %v5670_v50, %v4900_v49 }
 0x48c   :  { %v5690_v52 = vpop.f32.mrb[16].mxu1 }
 0x48d   :  { %v5691_v27 = vpop.f32.mrb[17].mxu1 }
 0x48e   :  { %v5692_v24 = vadd.f32 %v5691_v27, %v5690_v52  ;;  %v5693_v54 = vpop.f32.mrb[18].mxu1 }
 0x48f   :  { %v5694_v55 = vpop.f32.mrb[19].mxu1 }
 0x490   :  { %v4980_v56 = vadd.f32 %v5692_v24, %v4940_v51 }
 0x492   :  { %4985 = vst [vmem:[#allocation11] sm:$0xff] %v4980_v56 }
 0x493   :  { %4990 = vsyncadd [#allocation4], 96  ;;  %s6853_s4 = smov [#allocation11]  }
 0x494   :  { %s4991_s7 = sshll.u32 %s6853_s4, 4  ;;  %s4992_s7 = int_to_ptr.vmem [resolvable:$true] %s4991_s7 }
 0x495   :  { %s6813_s8 = scalar_lea.vmem %s4992_s7, 32  ;;  %s6817_s3 = scalar_lea.vmem %s4992_s7, 128 }
 0x496   :  { %p6814_p12 = scmp.ne.s32.totalorder %s4992_s7, %s6813_s8  ;;  %p6818_p13 = scmp.lt.s32.totalorder %s4992_s7, %s4992_s7 }
 0x497   :  { %p6819_p0 = scmp.lt.s32.totalorder %s6817_s3, %s6813_s8 }
 0x499   :  { %p6820_p1 = por %p6819_p0, %p6818_p13 }
 0x49b   :  { %p6821_p2 = pnand %p6820_p1, %p6814_p12 }
 0x49d   :  { %6824 = shalt.err (!%p6821_p2)
}
 0x49e   :  { %s6825_s10 = scalar_lea.hbm %s7113_s5, 32 }
 0x49f   :  { %p6826_p3 = scmp.ne.s32.totalorder %s7113_s5, %s6825_s10  ;;  %p6829_p4 = scmp.lt.u32.totalorder %s6825_s10, %s7113_s5 }
 0x4a1   :  { %p6831_p5 = pnand %p6829_p4, %p6826_p3 }
 0x4a3   :  { %6834 = shalt.err (!%p6831_p5)
}
 0x4a4   :  { %s6854_s15 = smov 32   ;;  %s6855_s16 = smov 2  }
 0x4a5   :  { %4997 = dma.vmem_to_hbm [thread:$0]  %s4992_s7, 32, %s7113_s5, [#allocation4], %s6854_s15, %s6854_s15, %s6855_s16  }
 0x4a6   :  { %6841 = dma.done.wait [#allocation4], 128  }
 0x4a7   :  { %6842 = vsyncadd [#allocation4], 4294967168 }
 0x4a8   :  { %5001 = vsyncpa [#allocation3], 1 }
 0x4a9   :  { %5002 = vsyncpa [#allocation6], 1 }
 0x4aa   :  { %5003 = vsyncpa [#allocation9], 1 }
 0x4ab   :  { %5004 = vsyncpa [#allocation4], 1 }

</bundles_post_ra>
